<compile_context>
chip_gen: v7x
topology: tpu7x:2x2x1
jax: 0.10.0
libtpu: 0.0.40
codegen_flags: <defaults>
</compile_context>

<pallas_src>
import jax
import jax.numpy as jnp
from jax.experimental import pallas as pl
from jax.experimental.pallas import tpu as pltpu

IN_DIM = 28 * 28      # 784
H1_DIM = 300
H2_DIM = 100
OUT_DIM = 10
OUT_PAD = 128         # lane-dense padded output width


# ----------------------------------------------------------------------------
# Pallas kernel: whole 3-layer MLP for one batch tile (tm rows).
# Three MXU matmuls with fp32 accumulation; bias-add + ReLU on the VPU in fp32.
# ----------------------------------------------------------------------------
def mlp_kernel(x_ref, w1_ref, b1_ref, w2_ref, b2_ref, w3_ref, b3_ref, o_ref):
    x = x_ref[...]                                                  # (tm, 784) f32
    h1 = jnp.dot(x.astype(jnp.bfloat16), w1_ref[...],
                 preferred_element_type=jnp.float32)
    h1 = jnp.maximum(h1 + b1_ref[...], 0.0)                         # (tm, 300) f32
    h2 = jnp.dot(h1.astype(jnp.bfloat16), w2_ref[...],
                 preferred_element_type=jnp.float32)
    h2 = jnp.maximum(h2 + b2_ref[...], 0.0)                         # (tm, 100) f32
    h3 = jnp.dot(h2.astype(jnp.bfloat16), w3_ref[...],
                 preferred_element_type=jnp.float32)
    o_ref[...] = h3 + b3_ref[...]                                   # (tm, 128) f32


def net_forward(x, packed_params, *, tm=128):
    """Forward pass of Net: fc1 -> relu -> fc2 -> relu -> fc3.

    x: (B, 784) float32, B a multiple of tm.
    packed_params: bf16 weights (in, out), fp32 biases (1, out); fc3 padded
    to OUT_PAD columns. Returns (B, 10) float32 logits.
    """
    w1, b1, w2, b2, w3p, b3p = packed_params
    B = x.shape[0]
    assert B % tm == 0, "batch must be a multiple of the batch tile"
    grid = (B // tm,)
    const = lambda i: (0, 0)   # weights/biases: same block every step -> stay in VMEM

    flops = 2 * B * (IN_DIM * H1_DIM + H1_DIM * H2_DIM + H2_DIM * OUT_PAD)
    bytes_accessed = (
        x.size * 4
        + (w1.size + w2.size + w3p.size) * 2          # bf16 weights
        + (b1.size + b2.size + b3p.size) * 4          # fp32 biases
        + B * OUT_PAD * 4                             # fp32 output
    )

    out = pl.pallas_call(
        mlp_kernel,
        out_shape=jax.ShapeDtypeStruct((B, OUT_PAD), jnp.float32),
        grid=grid,
        in_specs=[
            pl.BlockSpec((tm, IN_DIM), lambda i: (i, 0)),   # x: tiled over batch
            pl.BlockSpec(w1.shape, const),
            pl.BlockSpec(b1.shape, const),
            pl.BlockSpec(w2.shape, const),
            pl.BlockSpec(b2.shape, const),
            pl.BlockSpec(w3p.shape, const),
            pl.BlockSpec(b3p.shape, const),
        ],
        out_specs=pl.BlockSpec((tm, OUT_PAD), lambda i: (i, 0)),
        compiler_params=pltpu.CompilerParams(
            dimension_semantics=("parallel",)),             # v7x: shard batch over 2 TCs
        cost_estimate=pl.CostEstimate(
            flops=flops, bytes_accessed=bytes_accessed, transcendentals=0),
    )(x, w1, b1, w2, b2, w3p, b3p)
    return out[:, :OUT_DIM]


def init_params(key):
    """Deterministic init matching PyTorch nn.Linear default:
    U(-1/sqrt(fan_in), 1/sqrt(fan_in)) for both weight and bias.
    Weights stored as (in_features, out_features), float32."""
    dims = [(IN_DIM, H1_DIM), (H1_DIM, H2_DIM), (H2_DIM, OUT_DIM)]
    params = []
    for fan_in, fan_out in dims:
        key, kw, kb = jax.random.split(key, 3)
        bound = 1.0 / (float(fan_in) ** 0.5)
        w = jax.random.uniform(kw, (fan_in, fan_out), jnp.float32, -bound, bound)
        b = jax.random.uniform(kb, (1, fan_out), jnp.float32, -bound, bound)
        params += [w, b]
    return tuple(params)


def pack_params(params):
    """Cast weights to bf16 (HBM bandwidth) and pad fc3 to OUT_PAD columns
    (lane-dense output block). Biases stay fp32."""
    w1, b1, w2, b2, w3, b3 = params
    w3p = jnp.zeros((H2_DIM, OUT_PAD), jnp.float32).at[:, :OUT_DIM].set(w3)
    b3p = jnp.zeros((1, OUT_PAD), jnp.float32).at[:, :OUT_DIM].set(b3)
    return (w1.astype(jnp.bfloat16), b1,
            w2.astype(jnp.bfloat16), b2,
            w3p.astype(jnp.bfloat16), b3p)


def reference_forward(x, packed_params):
    """Pure-JAX reference with numerics matched to the kernel
    (bf16 dot inputs, fp32 accumulation, fp32 bias/ReLU)."""
    w1, b1, w2, b2, w3p, b3p = packed_params
    h1 = jnp.maximum(
        jnp.dot(x.astype(jnp.bfloat16), w1, preferred_element_type=jnp.float32) + b1, 0.0)
    h2 = jnp.maximum(
        jnp.dot(h1.astype(jnp.bfloat16), w2, preferred_element_type=jnp.float32) + b2, 0.0)
    h3 = jnp.dot(h2.astype(jnp.bfloat16), w3p, preferred_element_type=jnp.float32) + b3p
    return h3[:, :OUT_DIM]


if __name__ == "__main__":
    key = jax.random.PRNGKey(0)
    key, kx = jax.random.split(key)

    # Batch of flattened 28x28 images (deepfool-style candidates stacked into
    # one call so weight DMA / dispatch is amortized and the MXU M-dim is full).
    B = 256
    images = jax.random.normal(kx, (B, 28, 28), dtype=jnp.float32)
    x = images.reshape(B, IN_DIM)

    params = init_params(key)
    packed = pack_params(params)

    out = net_forward(x, packed)
    out = jax.block_until_ready(out)

    ref = reference_forward(x, packed)
    assert out.shape == (B, OUT_DIM)
    assert jnp.allclose(out, ref, atol=1e-3, rtol=1e-3), "mismatch vs reference"

    print("KERNEL_OK")
</pallas_src>

<mosaic_0001>
module attributes {stable_mosaic.version = 11 : i64} {
  func.func @mlp_kernel(%arg0: i32, %arg1: memref<128x784xf32, #tpu.memory_space<vmem>>, %arg2: memref<784x300xbf16, #tpu.memory_space<vmem>>, %arg3: memref<1x300xf32, #tpu.memory_space<vmem>>, %arg4: memref<300x100xbf16, #tpu.memory_space<vmem>>, %arg5: memref<1x100xf32, #tpu.memory_space<vmem>>, %arg6: memref<100x128xbf16, #tpu.memory_space<vmem>>, %arg7: memref<1x128xf32, #tpu.memory_space<vmem>>, %arg8: memref<128x128xf32, #tpu.memory_space<vmem>>) attributes {dimension_semantics = [#tpu.dimension_semantics<parallel>], iteration_bounds = array<i64: 2>, scalar_prefetch = 0 : i64, scratch_operands = 0 : i64, tpu.core_type = #tpu.core_type<tc>, window_params = [{transform_indices = @transform_0, window_bounds = array<i64: 128, 784>}, {pipeline_mode = #tpu.pipeline_mode<synchronous>, transform_indices = @transform_1, window_bounds = array<i64: 784, 300>}, {pipeline_mode = #tpu.pipeline_mode<synchronous>, transform_indices = @transform_2, window_bounds = array<i64: 1, 300>}, {pipeline_mode = #tpu.pipeline_mode<synchronous>, transform_indices = @transform_3, window_bounds = array<i64: 300, 100>}, {pipeline_mode = #tpu.pipeline_mode<synchronous>, transform_indices = @transform_4, window_bounds = array<i64: 1, 100>}, {pipeline_mode = #tpu.pipeline_mode<synchronous>, transform_indices = @transform_5, window_bounds = array<i64: 100, 128>}, {pipeline_mode = #tpu.pipeline_mode<synchronous>, transform_indices = @transform_6, window_bounds = array<i64: 1, 128>}, {transform_indices = @transform_7, window_bounds = array<i64: 128, 128>}]} {
    %c0 = arith.constant 0 : index
    %c0_0 = arith.constant 0 : index
    %0 = vector.load %arg1[%c0, %c0_0] : memref<128x784xf32, #tpu.memory_space<vmem>>, vector<128x784xf32>
    %1 = arith.truncf %0 : vector<128x784xf32> to vector<128x784xbf16>
    %c0_1 = arith.constant 0 : index
    %c0_2 = arith.constant 0 : index
    %2 = vector.load %arg2[%c0_1, %c0_2] : memref<784x300xbf16, #tpu.memory_space<vmem>>, vector<784x300xbf16>
    %cst = arith.constant dense<0.000000e+00> : vector<128x300xf32>
    %3 = tpu.matmul %1, %2, %cst {dimension_numbers = #tpu.dot_dimension_numbers<[1], [0], [0], [1], [0, 0, 1, 1], [], []>} : vector<128x784xbf16>, vector<784x300xbf16>, vector<128x300xf32> -> vector<128x300xf32>
    %c0_3 = arith.constant 0 : index
    %c0_4 = arith.constant 0 : index
    %4 = vector.load %arg3[%c0_3, %c0_4] : memref<1x300xf32, #tpu.memory_space<vmem>>, vector<1x300xf32>
    %5 = vector.broadcast %4 : vector<1x300xf32> to vector<128x300xf32>
    %6 = arith.addf %3, %5 : vector<128x300xf32>
    %cst_5 = arith.constant 0.000000e+00 : f32
    %7 = vector.broadcast %cst_5 : f32 to vector<128x300xf32>
    %8 = arith.maximumf %6, %7 : vector<128x300xf32>
    %9 = arith.truncf %8 : vector<128x300xf32> to vector<128x300xbf16>
    %c0_6 = arith.constant 0 : index
    %c0_7 = arith.constant 0 : index
    %10 = vector.load %arg4[%c0_6, %c0_7] : memref<300x100xbf16, #tpu.memory_space<vmem>>, vector<300x100xbf16>
    %cst_8 = arith.constant dense<0.000000e+00> : vector<128x100xf32>
    %11 = tpu.matmul %9, %10, %cst_8 {dimension_numbers = #tpu.dot_dimension_numbers<[1], [0], [0], [1], [0, 0, 1, 1], [], []>} : vector<128x300xbf16>, vector<300x100xbf16>, vector<128x100xf32> -> vector<128x100xf32>
    %c0_9 = arith.constant 0 : index
    %c0_10 = arith.constant 0 : index
    %12 = vector.load %arg5[%c0_9, %c0_10] : memref<1x100xf32, #tpu.memory_space<vmem>>, vector<1x100xf32>
    %13 = vector.broadcast %12 : vector<1x100xf32> to vector<128x100xf32>
    %14 = arith.addf %11, %13 : vector<128x100xf32>
    %cst_11 = arith.constant 0.000000e+00 : f32
    %15 = vector.broadcast %cst_11 : f32 to vector<128x100xf32>
    %16 = arith.maximumf %14, %15 : vector<128x100xf32>
    %17 = arith.truncf %16 : vector<128x100xf32> to vector<128x100xbf16>
    %c0_12 = arith.constant 0 : index
    %c0_13 = arith.constant 0 : index
    %18 = vector.load %arg6[%c0_12, %c0_13] : memref<100x128xbf16, #tpu.memory_space<vmem>>, vector<100x128xbf16>
    %cst_14 = arith.constant dense<0.000000e+00> : vector<128x128xf32>
    %19 = tpu.matmul %17, %18, %cst_14 {dimension_numbers = #tpu.dot_dimension_numbers<[1], [0], [0], [1], [0, 0, 1, 1], [], []>} : vector<128x100xbf16>, vector<100x128xbf16>, vector<128x128xf32> -> vector<128x128xf32>
    %c0_15 = arith.constant 0 : index
    %c0_16 = arith.constant 0 : index
    %20 = vector.load %arg7[%c0_15, %c0_16] : memref<1x128xf32, #tpu.memory_space<vmem>>, vector<1x128xf32>
    %21 = vector.broadcast %20 : vector<1x128xf32> to vector<128x128xf32>
    %22 = arith.addf %19, %21 : vector<128x128xf32>
    %c0_17 = arith.constant 0 : index
    %c0_18 = arith.constant 0 : index
    %23 = vector.load %arg8[%c0_17, %c0_18] : memref<128x128xf32, #tpu.memory_space<vmem>>, vector<128x128xf32>
    tpu.vector_store %arg8[%c0_17, %c0_18], %22 {strides = array<i32>} : memref<128x128xf32, #tpu.memory_space<vmem>>, vector<128x128xf32>,
    return
  }
  func.func @transform_0(%arg0: i32) -> (i32, i32) {
    %c0_i32 = arith.constant 0 : i32
    %c0_i32_0 = arith.constant 0 : i32
    return %arg0, %c0_i32 : i32, i32
  }
  func.func @transform_1(%arg0: i32) -> (i32, i32) {
    %c0_i32 = arith.constant 0 : i32
    %c0_i32_0 = arith.constant 0 : i32
    %c0_i32_1 = arith.constant 0 : i32
    return %c0_i32, %c0_i32_0 : i32, i32
  }
  func.func @transform_2(%arg0: i32) -> (i32, i32) {
    %c0_i32 = arith.constant 0 : i32
    %c0_i32_0 = arith.constant 0 : i32
    %c0_i32_1 = arith.constant 0 : i32
    return %c0_i32, %c0_i32_0 : i32, i32
  }
  func.func @transform_3(%arg0: i32) -> (i32, i32) {
    %c0_i32 = arith.constant 0 : i32
    %c0_i32_0 = arith.constant 0 : i32
    %c0_i32_1 = arith.constant 0 : i32
    return %c0_i32, %c0_i32_0 : i32, i32
  }
  func.func @transform_4(%arg0: i32) -> (i32, i32) {
    %c0_i32 = arith.constant 0 : i32
    %c0_i32_0 = arith.constant 0 : i32
    %c0_i32_1 = arith.constant 0 : i32
    return %c0_i32, %c0_i32_0 : i32, i32
  }
  func.func @transform_5(%arg0: i32) -> (i32, i32) {
    %c0_i32 = arith.constant 0 : i32
    %c0_i32_0 = arith.constant 0 : i32
    %c0_i32_1 = arith.constant 0 : i32
    return %c0_i32, %c0_i32_0 : i32, i32
  }
  func.func @transform_6(%arg0: i32) -> (i32, i32) {
    %c0_i32 = arith.constant 0 : i32
    %c0_i32_0 = arith.constant 0 : i32
    %c0_i32_1 = arith.constant 0 : i32
    return %c0_i32, %c0_i32_0 : i32, i32
  }
  func.func @transform_7(%arg0: i32) -> (i32, i32) {
    %c0_i32 = arith.constant 0 : i32
    %c0_i32_0 = arith.constant 0 : i32
    return %arg0, %c0_i32 : i32, i32
  }
}

</mosaic_0001>

<bundles_post_ra>
// kernel: tpu_custom_call.1
= control target key start
LH: loop header
LB: loop body
LE: loop exit
PB: predicated region body
PF: predicated region fallthrough
CT: control target
= control target key end

     0   :  { %12 = vsyncpa [#allocation3], 0  ;;  %s5334_s0 = inlined_call_operand.vmem [shape: f32[256,784], index: 0, kind: input, shape index: {}]   ;;  %s5335_s1 = inlined_call_operand.vmem [shape: bf16[784,300], index: 1, kind: input, shape index: {}]   ;;  %s5336_s2 = inlined_call_operand.vmem [shape: f32[1,300], index: 2, kind: input, shape index: {}]   ;;  %s5337_s3 = inlined_call_operand.vmem [shape: bf16[300,100], index: 3, kind: input, shape index: {}]   ;;  %s5338_s4 = inlined_call_operand.vmem [shape: f32[1,100], index: 4, kind: input, shape index: {}]   ;;  %s5339_s5 = inlined_call_operand.vmem [shape: bf16[100,128], index: 5, kind: input, shape index: {}]   ;;  %s5340_s6 = inlined_call_operand.vmem [shape: f32[1,128], index: 6, kind: input, shape index: {}]   ;;  %s5341_s7 = inlined_call_operand.hbm [shape: f32[256,128], index: 7, kind: output, shape index: {}]  }
   0x1   :  { %14 = vsyncpa [#allocation3 + $0x1], 0  ;;  %s4152_s24 = smov 0   ;;  %s4154_s25 = smov 0  }
   0x2   :  { %s4156_s26 = smov 0   ;;  %s4158_s27 = smov 0  }
   0x3 LB: > { %s4173_s28 = sadd.s32 4294967295, %s4106_s27   ;;  %s3068_s29 = sadd.s32 4294967294, %s4106_s27   ;;  %s4106_s27 = sphi %s4158_s27, %s5348_s27   ;;  %s4102_s26 = sphi %s4156_s26, %s5347_s26   ;;  %s4098_s25 = sphi %s4154_s25, %s5346_s25   ;;  %s4094_s24 = sphi %s4152_s24, %s5345_s24  }
   0x4   : > { %s4177_s30 = sadd.s32 1, %s4106_s27   ;;  %s179_s8 = sadd.s32 1, %s4102_s26 }
   0x5   : > { %s176_s9 = ssub.s32 %s4106_s27, %s4177_s30  ;;  %p189_p0 = scmp.ne.s32.totalorder %s4102_s26, %s4098_s25 }
   0x6   : > { %p177_p1 = scmp.eq.s32.totalorder %s176_s9, 0  ;;  %p190_p2 = scmp.eq.s32.totalorder %s4173_s28, 1 }
   0x7   : > { %p195_p3 = scmp.ne.s32.totalorder %s4098_s25, %s4094_s24  ;;  %p196_p4 = scmp.eq.s32.totalorder %s3068_s29, 1 }
   0x8   : > { %s4188_s10 = scalar_select %p177_p1, %s4102_s26, %s179_s8  }
   0x9   : > { %p4190_p5 = por %p190_p2, %p189_p0  ;;  %p4194_p6 = por %p196_p4, %p195_p3 }
   0xa   : > { %p3071_p7 = scmp.ge.s32.totalorder %s4106_s27, 1  ;;  %p242_p8 = scmp.lt.s32.totalorder %s4106_s27, 3 }
   0xc   : > { %p243_p9 = pnand %p3071_p7, %p242_p8 }
   0xd   : > { %v3822_v0 = vld [vmem:[%s5335_s1 + $0x4] ss:$12 sps:$4 sm:$0xff] (!%p243_p9)   ;;  %v3824_v1 = vld [vmem:[%s5335_s1 + $0xc8] ss:$12 sps:$4 sm:$0xff] (!%p243_p9)   ;;  %v3825_v2 = vld [vmem:[%s5335_s1] ss:$12 sps:$4 sm:$0xff] (!%p243_p9)  }
   0xe   : > { %246 = sbr.rel (%p243_p9) target bundleno = 1005 (0x3ed), region = 48  ;;  %1474 = vmatprep.subr.bf16.mxu0 (!%p243_p9), %v3822_v0  ;;  %3288 = vmatprep.subr.bf16.mxu1 (!%p243_p9), %v3824_v1  ;;  %v3826_v3 = vld [vmem:[%s5335_s1 + $0x8] ss:$12 sps:$4 sm:$0xff] (!%p243_p9)   ;;  %s3073_s21 = sshll.u32 (!%p243_p9), %s4173_s28, 4  ;;  %v3829_v5 = vld [vmem:[%s5335_s1 + $0xe0] ss:$12 sps:$4 sm:$0xff] (!%p243_p9)  }
   0xf   : > { %1475 = vmatpush1.bf16.msra.mxu0 (!%p243_p9), %v3825_v2  ;;  %v3827_v4 = vld [vmem:[%s5335_s1 + $0x1c] ss:$12 sps:$4 sm:$0xff] (!%p243_p9)   ;;  %3289 = vmatpush3.bf16.msra.mxu1 (!%p243_p9), %v3826_v3  ;;  %v3830_v6 = vld [vmem:[%s5335_s1 + $0x18] ss:$12 sps:$4 sm:$0xff] (!%p243_p9)   ;;  %v3831_v7 = vld [vmem:[%s5335_s1 + $0x20] ss:$12 sps:$4 sm:$0xff] (!%p243_p9)  }
  0x10   : > { %1476 = vmatprep.subr.bf16.mxu0 (!%p243_p9), %v3827_v4  ;;  %3290 = vmatprep.subr.bf16.mxu1 (!%p243_p9), %v3829_v5  ;;  %v3832_v8 = vld [vmem:[%s5335_s1 + $0x34] ss:$12 sps:$4 sm:$0xff] (!%p243_p9)   ;;  %p4228_p10 = scmp.lt.s32.totalorder (!%p243_p9), %s3073_s21, 31  ;;  %v3834_v9 = vld [vmem:[%s5335_s1 + $0xf8] ss:$12 sps:$4 sm:$0xff] (!%p243_p9)   ;;  %vm1449_vm0 = vcmask (!%p243_p9), 130048  }
  0x11   : > { %v3835_v10 = vld [vmem:[%s5335_s1 + $0x30] ss:$12 sps:$4 sm:$0xff] (!%p243_p9)   ;;  %v3836_v11 = vld [vmem:[%s5335_s1 + $0x38] ss:$12 sps:$4 sm:$0xff] (!%p243_p9)   ;;  %v3840_v14 = vld [vmem:[%s5335_s1 + $0x48] ss:$12 sps:$4 sm:$0xff] (!%p243_p9)  }
  0x12   : > { %v3837_v12 = vld [vmem:[%s5335_s1 + $0x4c] ss:$12 sps:$4 sm:$0xff] (!%p243_p9)   ;;  %v3839_v13 = vld [vmem:[%s5335_s1 + $0x110] ss:$12 sps:$4 sm:$0xff] (!%p243_p9)   ;;  %v3844_v17 = vld [vmem:[%s5335_s1 + $0x128] ss:$12 sps:$4 sm:$0xff] (!%p243_p9)  }
  0x13   : > { %1477 = vmatpush1.bf16.msra.mxu0 (!%p243_p9), %v3830_v6  ;;  %3291 = vmatpush3.bf16.msra.mxu1 (!%p243_p9), %v3831_v7  ;;  %v3841_v15 = vld [vmem:[%s5335_s1 + $0x50] ss:$12 sps:$4 sm:$0xff] (!%p243_p9)   ;;  %v3845_v18 = vld [vmem:[%s5335_s1 + $0x60] ss:$12 sps:$4 sm:$0xff] (!%p243_p9)   ;;  %v3846_v19 = vld [vmem:[%s5335_s1 + $0x68] ss:$12 sps:$4 sm:$0xff] (!%p243_p9)  }
  0x14   : > { %1478 = vmatprep.subr.bf16.mxu0 (!%p243_p9), %v3832_v8  ;;  %3292 = vmatprep.subr.bf16.mxu1 (!%p243_p9), %v3834_v9  ;;  %v3842_v16 = vld [vmem:[%s5335_s1 + $0x64] ss:$12 sps:$4 sm:$0xff] (!%p243_p9)   ;;  %v3847_v20 = vld [vmem:[%s5335_s1 + $0x7c] ss:$12 sps:$4 sm:$0xff] (!%p243_p9)   ;;  %v3849_v21 = vld [vmem:[%s5335_s1 + $0x140] ss:$12 sps:$4 sm:$0xff] (!%p243_p9)  }
  0x15   : > { %s5350_s21 = smov (!%p4228_p10, %s3073_s21), 31  ;;  %v3850_v22 = vld [vmem:[%s5335_s1 + $0x78] ss:$12 sps:$4 sm:$0xff]   ;;  %v3851_v23 = vld [vmem:[%s5335_s1 + $0x80] ss:$12 sps:$4 sm:$0xff]   ;;  %vm2569_vm1 = vcmask 1045504  }
  0x16   : > { %s3779_s20 = smul.u32 56, %s5350_s21  ;;  %v3852_v24 = vld [vmem:[%s5335_s1 + $0x94] ss:$12 sps:$4 sm:$0xff]   ;;  %v3854_v25 = vld [vmem:[%s5335_s1 + $0x158] ss:$12 sps:$4 sm:$0xff]   ;;  %vm2544_vm2 = vcmask 359424  }
  0x17   : > { %1479 = vmatpush1.bf16.msra.mxu0 %v3835_v10  ;;  %3293 = vmatpush3.bf16.msra.mxu1 %v3836_v11  ;;  %v3855_v26 = vld [vmem:[%s5335_s1 + $0x90] ss:$12 sps:$4 sm:$0xff]   ;;  %v3856_v27 = vld [vmem:[%s5335_s1 + $0x98] ss:$12 sps:$4 sm:$0xff]   ;;  %v3860_v30 = vld [vmem:[%s5335_s1 + $0xa8] ss:$12 sps:$4 sm:$0xff]  }
  0x18   : > { %1480 = vmatprep.subr.bf16.mxu0 %v3837_v12  ;;  %3294 = vmatprep.subr.bf16.mxu1 %v3839_v13  ;;  %s4291_s19 = scalar_lea.vmem %s5334_s0, %s3779_s20  ;;  %v3857_v28 = vld [vmem:[%s5335_s1 + $0xac] ss:$12 sps:$4 sm:$0xff]   ;;  %v3859_v29 = vld [vmem:[%s5335_s1 + $0x170] ss:$12 sps:$4 sm:$0xff]   ;;  %v3868_v45 = vld [vmem:[%s5335_s1 + $0xf4] ss:$12 sps:$4 sm:$0xff]  }
  0x19   : > { %v285_v31 = vld [vmem:[%s4291_s19 + $0x8] sm:$0xff]  ;;  %v292_v32 = vld [vmem:[%s4291_s19 + $0x40] sm:$0xff]  ;;  %v3861_v33 = vld [vmem:[%s5335_s1 + $0xb0] ss:$12 sps:$4 sm:$0xff]   ;;  %vm2875_vm3 = vcmask 1041408   ;;  %vm2850_vm4 = vcmask 818176  }
  0x1a   : > { %v397_v34 = vpack.c.bf16 %v292_v32, %v285_v31  ;;  %v3862_v35 = vld [vmem:[%s5335_s1 + $0xc4] ss:$12 sps:$4 sm:$0xff]   ;;  %v291_v37 = vld [vmem:[%s4291_s19 + $0x38] sm:$0xff]  ;;  %v3864_v41 = vld [vmem:[%s5335_s1 + $0xc0] ss:$12 sps:$4 sm:$0xff]   ;;  %s3287_s18 = sshll.u32 %s4173_s28, 11 }
  0x1b   : > { %1481 = vmatpush1.bf16.msra.mxu0 %v3840_v14  ;;  %3295 = vmatpush3.bf16.msra.mxu1 %v3841_v15  ;;  %v284_v36 = vld [vmem:[%s4291_s19] sm:$0xff]  ;;  %v299_v38 = vld [vmem:[%s4291_s19 + $0x78] sm:$0xff]  ;;  %v306_v39 = vld [vmem:[%s4291_s19 + $0xb0] sm:$0xff]  ;;  %s5284_s23 = scalar_lea.hbm %s5341_s7, %s3287_s18  ;;  %s4109_s8 = smov [#allocation2]  }
  0x1c   : > { %1482 = vmatprep.subr.bf16.mxu0 %v3842_v16  ;;  %3296 = vmatprep.subr.bf16.mxu1 %v3844_v17  ;;  %v4317_v40 = vpack.c.bf16 %v291_v37, %v284_v36  ;;  %v3865_v42 = vld [vmem:[%s5335_s1 + $0xdc] ss:$12 sps:$4 sm:$0xff]   ;;  %v4325_v43 = vpack.c.bf16 %v306_v39, %v299_v38  ;;  %v3867_v44 = vld [vmem:[%s5335_s1 + $0xd8] ss:$12 sps:$4 sm:$0xff]   ;;  %v298_v46 = vld [vmem:[%s4291_s19 + $0x70] sm:$0xff]  ;;  %s4048_s9 = sshll.u32 %s4109_s8, 4  ;;  %s4049_s9 = int_to_ptr.vmem [resolvable:$false] %s4048_s9 }
  0x1d   : > { %1958 = vmatprep.mubr.bf16.mxu1 %v397_v34  ;;  %1506 = vmatprep.mubr.bf16.mxu0 %v397_v34  ;;  %v305_v47 = vld [vmem:[%s4291_s19 + $0xa8] sm:$0xff]  ;;  %v320_v49 = vld [vmem:[%s4291_s19 + $0x120] sm:$0xff]  ;;  %v3870_v51 = vld [vmem:[%s5335_s1 + $0xf0] ss:$12 sps:$4 sm:$0xff]   ;;  %s4050_s13 = scalar_lea.vmem %s4049_s9, 4096 }
  0x1e   : > { %v313_v48 = vld [vmem:[%s4291_s19 + $0xe8] sm:$0xff]  ;;  %v4339_v50 = vpack.c.bf16 %v305_v47, %v298_v46  ;;  %v3874_v55 = vld [vmem:[%s5335_s1 + $0x124] ss:$12 sps:$4 sm:$0xff]   ;;  %v319_v57 = vld [vmem:[%s4291_s19 + $0x118] sm:$0xff] }
  0x1f   : > { %1483 = vmatpush1.bf16.msra.mxu0 %v3845_v18  ;;  %3297 = vmatpush3.bf16.msra.mxu1 %v3846_v19  ;;  %v3871_v52 = vld [vmem:[%s5335_s1 + $0x10c] ss:$12 sps:$4 sm:$0xff]   ;;  %v4347_v53 = vpack.c.bf16 %v320_v49, %v313_v48  ;;  %v3873_v54 = vld [vmem:[%s5335_s1 + $0x108] ss:$12 sps:$4 sm:$0xff]   ;;  %v312_v56 = vld [vmem:[%s4291_s19 + $0xe0] sm:$0xff] }
  0x20   : > { %1484 = vmatprep.subr.bf16.mxu0 %v3847_v20  ;;  %3298 = vmatprep.subr.bf16.mxu1 %v3849_v21  ;;  %v327_v58 = vld [vmem:[%s4291_s19 + $0x158] sm:$0xff]  ;;  %v334_v59 = vld [vmem:[%s4291_s19 + $0x190] sm:$0xff]  ;;  %v4367_v62 = vpack.c.bf16 %v319_v57, %v312_v56  ;;  %v3876_v63 = vld [vmem:[%s5335_s1 + $0x120] ss:$12 sps:$4 sm:$0xff]  }
  0x21   : > { %v3889_v60 = vld [vmem:[%s5335_s1 + $0x248] ss:$12 sps:$4 sm:$0xff]   ;;  %v4375_v1 = vpack.c.bf16 %v334_v59, %v327_v58  ;;  %v3894_v2 = vld [vmem:[%s5335_s1 + $0x260] ss:$12 sps:$4 sm:$0xff]   ;;  %v3879_v3 = vld [vmem:[%s5335_s1 + $0x138] ss:$12 sps:$4 sm:$0xff]  }
  0x22   : > { %v3890_v61 = vld [vmem:[%s5335_s1 + $0x188] ss:$12 sps:$4 sm:$0xff]   ;;  %v3895_v4 = vld [vmem:[%s5335_s1 + $0x1a0] ss:$12 sps:$4 sm:$0xff]   ;;  %v3899_v10 = vld [vmem:[%s5335_s1 + $0x278] ss:$12 sps:$4 sm:$0xff]  }
  0x23   : > { %1485 = vmatpush1.bf16.msra.mxu0 %v3850_v22  ;;  %3299 = vmatpush3.bf16.msra.mxu1 %v3851_v23  ;;  %v3877_v0 = vld [vmem:[%s5335_s1 + $0x13c] ss:$12 sps:$4 sm:$0xff]   ;;  %v3880_v5 = vld [vmem:[%s5335_s1 + $0x154] ss:$12 sps:$4 sm:$0xff]   ;;  %v3900_v11 = vld [vmem:[%s5335_s1 + $0x1b8] ss:$12 sps:$4 sm:$0xff]  }
  0x24   : > { %1486 = vmatprep.subr.bf16.mxu0 %v3852_v24  ;;  %3300 = vmatprep.subr.bf16.mxu1 %v3854_v25  ;;  %v326_v6 = vld [vmem:[%s4291_s19 + $0x150] sm:$0xff]  ;;  %v333_v7 = vld [vmem:[%s4291_s19 + $0x188] sm:$0xff]  ;;  %v348_v9 = vld [vmem:[%s4291_s19 + $0x200] sm:$0xff] }
  0x25   : > { %v341_v8 = vld [vmem:[%s4291_s19 + $0x1c8] sm:$0xff]  ;;  %v4401_v12 = vpack.c.bf16 %v333_v7, %v326_v6  ;;  %v3882_v13 = vld [vmem:[%s5335_s1 + $0x150] ss:$12 sps:$4 sm:$0xff]   ;;  %v340_v20 = vld [vmem:[%s4291_s19 + $0x1c0] sm:$0xff] }
  0x26   : > { %v3883_v14 = vld [vmem:[%s5335_s1 + $0x16c] ss:$12 sps:$4 sm:$0xff]   ;;  %v4409_v15 = vpack.c.bf16 %v348_v9, %v341_v8  ;;  %v3904_v16 = vld [vmem:[%s5335_s1 + $0x290] ss:$12 sps:$4 sm:$0xff]   ;;  %v3885_v18 = vld [vmem:[%s5335_s1 + $0x168] ss:$12 sps:$4 sm:$0xff]  }
  0x27   : > { %1487 = vmatpush1.bf16.msra.mxu0 %v3855_v26  ;;  %3301 = vmatpush3.bf16.msra.mxu1 %v3856_v27  ;;  %v3905_v17 = vld [vmem:[%s5335_s1 + $0x1d0] ss:$12 sps:$4 sm:$0xff]   ;;  %v3909_v24 = vld [vmem:[%s5335_s1 + $0x2a8] ss:$12 sps:$4 sm:$0xff]   ;;  %v3886_v26 = vld [vmem:[%s5335_s1 + $0x180] ss:$12 sps:$4 sm:$0xff]  }
  0x28   : > { %1488 = vmatprep.subr.bf16.mxu0 %v3857_v28  ;;  %3302 = vmatprep.subr.bf16.mxu1 %v3859_v29  ;;  %v3888_v19 = vld [vmem:[%s5335_s1 + $0x184] ss:$12 sps:$4 sm:$0xff]   ;;  %v347_v21 = vld [vmem:[%s4291_s19 + $0x1f8] sm:$0xff]  ;;  %v3910_v25 = vld [vmem:[%s5335_s1 + $0x1e8] ss:$12 sps:$4 sm:$0xff]  }
  0x29   : > { %v355_v22 = vld [vmem:[%s4291_s19 + $0x238] sm:$0xff]  ;;  %v362_v23 = vld [vmem:[%s4291_s19 + $0x270] sm:$0xff]  ;;  %v4438_v27 = vpack.c.bf16 %v347_v21, %v340_v20  ;;  %v3914_v29 = vld [vmem:[%s5335_s1 + $0x2c0] ss:$12 sps:$4 sm:$0xff]  }
  0x2a   : > { %v3893_v28 = vld [vmem:[%s5335_s1 + $0x19c] ss:$12 sps:$4 sm:$0xff]   ;;  %v3915_v31 = vld [vmem:[%s5335_s1 + $0x200] ss:$12 sps:$4 sm:$0xff]   ;;  %v3891_v32 = vld [vmem:[%s5335_s1 + $0x198] ss:$12 sps:$4 sm:$0xff]  }
  0x2b   : > { %1489 = vmatpush1.bf16.msra.mxu0 %v3860_v30  ;;  %3303 = vmatpush3.bf16.msra.mxu1 %v3861_v33  ;;  %v4446_v30 = vpack.c.bf16 %v362_v23, %v355_v22  ;;  %v3898_v33 = vld [vmem:[%s5335_s1 + $0x1b4] ss:$12 sps:$4 sm:$0xff]   ;;  %v369_v36 = vld [vmem:[%s4291_s19 + $0x2a8] sm:$0xff]  ;;  %v3919_v38 = vld [vmem:[%s5335_s1 + $0x2d8] ss:$12 sps:$4 sm:$0xff]  }
  0x2c   : > { %1490 = vmatprep.subr.bf16.mxu0 %v3862_v35  ;;  %3352 = vmatprep.subr.bf16.mxu1 %v3889_v60  ;;  %v354_v34 = vld [vmem:[%s4291_s19 + $0x230] sm:$0xff]  ;;  %v361_v35 = vld [vmem:[%s4291_s19 + $0x268] sm:$0xff]  ;;  %v376_v37 = vld [vmem:[%s4291_s19 + $0x2e0] sm:$0xff] }
  0x2d   : > { %v3920_v39 = vld [vmem:[%s5335_s1 + $0x218] ss:$12 sps:$4 sm:$0xff]   ;;  %v3901_v46 = vld [vmem:[%s5335_s1 + $0x1c8] ss:$12 sps:$4 sm:$0xff]   ;;  %v3926_v9 = vld [vmem:[%s5335_s1 + $0x240] ss:$12 sps:$4 sm:$0xff]  }
  0x2e   : > { %1959 = vmatmul.mubr.bf16.vlgmr.msra.gmra.mrb[0].mxu1 %v4317_v40  ;;  %v3908_v47 = vld [vmem:[%s5335_s1 + $0x1e4] ss:$12 sps:$4 sm:$0xff]   ;;  %v375_v49 = vld [vmem:[%s4291_s19 + $0x2d8] sm:$0xff]  ;;  %v3918_v57 = vld [vmem:[%s5335_s1 + $0x214] ss:$12 sps:$4 sm:$0xff]  }
  0x2f   : > { %1491 = vmatpush1.bf16.msra.mxu0 %v3864_v41  ;;  %1966 = vmatprep.mubr.bf16.mxu1 %v4325_v43  ;;  %v4474_v41 = vpack.c.bf16 %v361_v35, %v354_v34  ;;  %v368_v48 = vld [vmem:[%s4291_s19 + $0x2a0] sm:$0xff]  ;;  %v382_v58 = vld [vmem:[%s4291_s19 + $0x310] sm:$0xff]  ;;  %v389_v59 = vld [vmem:[%s4291_s19 + $0x348] sm:$0xff] }
  0x30   : > { %1492 = vmatprep.subr.bf16.mxu0 %v3865_v42  ;;  %3353 = vmatpush3.bf16.msra.mxu1 %v3890_v61  ;;  %v3903_v42 = vld [vmem:[%s5335_s1 + $0x1cc] ss:$12 sps:$4 sm:$0xff]   ;;  %v294_v61 = vld [vmem:[%s4291_s19 + $0x50] sm:$0xff]  ;;  %v308_v8 = vld [vmem:[%s4291_s19 + $0xc0] sm:$0xff] }
  0x31   : > { %3354 = vmatprep.subr.bf16.mxu1 %v3894_v2  ;;  %v3911_v56 = vld [vmem:[%s5335_s1 + $0x1f8] ss:$12 sps:$4 sm:$0xff]   ;;  %v3921_v2 = vld [vmem:[%s5335_s1 + $0x228] ss:$12 sps:$4 sm:$0xff]   ;;  %v3959_v21 = vld [vmem:[%s5335_s1 + $0x320] ss:$12 sps:$4 sm:$0xff]  }
  0x32   : > { %v287_v60 = vld [vmem:[%s4291_s19 + $0x18] sm:$0xff]  ;;  %v301_v6 = vld [vmem:[%s4291_s19 + $0x88] sm:$0xff]  ;;  %v322_v20 = vld [vmem:[%s4291_s19 + $0x130] sm:$0xff] }
  0x33   : > { %1493 = vmatpush1.bf16.msra.mxu0 %v3867_v44  ;;  %v4482_v44 = vpack.c.bf16 %v376_v37, %v369_v36  ;;  %v3953_v7 = vld [vmem:[%s5335_s1 + $0x3c8] ss:$12 sps:$4 sm:$0xff]   ;;  %v3963_v22 = vld [vmem:[%s5335_s1 + $0x3f8] ss:$12 sps:$4 sm:$0xff]   ;;  %v3932_v23 = vld [vmem:[%s5335_s1 + $0x270] ss:$12 sps:$4 sm:$0xff]  }
  0x34   : > { %1494 = vmatprep.subr.bf16.mxu0 %v3868_v45  ;;  %3355 = vmatpush3.bf16.msra.mxu1 %v3895_v4  ;;  %v3925_v45 = vld [vmem:[%s5335_s1 + $0x230] ss:$12 sps:$4 sm:$0xff]   ;;  %v336_v34 = vld [vmem:[%s4291_s19 + $0x1a0] sm:$0xff]  ;;  %v3973_v36 = vld [vmem:[%s5335_s1 + $0x428] ss:$12 sps:$4 sm:$0xff]  }
  0x35   : > { %3356 = vmatprep.subr.bf16.mxu1 %v3899_v10  ;;  %v286_v4 = vld [vmem:[%s4291_s19 + $0x10] sm:$0xff]  ;;  %v3938_v37 = vld [vmem:[%s5335_s1 + $0x2a0] ss:$12 sps:$4 sm:$0xff]  }
  0x36   : > { %1967 = vmatmul.mubr.bf16.gmra.mrb[4].mxu1 %v4339_v50  ;;  %v3969_v35 = vld [vmem:[%s5335_s1 + $0x350] ss:$12 sps:$4 sm:$0xff]  }
  0x37   : > { %1495 = vmatpush1.bf16.msra.mxu0 %v3870_v51  ;;  %1974 = vmatprep.mubr.bf16.mxu1 %v4347_v53  ;;  %v390_v51 = vld [vmem:[%s4291_s19 + $0x350] sm:$0xff] }
  0x38   : > { %1496 = vmatprep.subr.bf16.mxu0 %v3871_v52  ;;  %3357 = vmatpush3.bf16.msra.mxu1 %v3900_v11  ;;  %v3906_v52 = vld [vmem:[%s5335_s1 + $0x1e0] ss:$12 sps:$4 sm:$0xff]   ;;  %v3931_v11 = vld [vmem:[%s5335_s1 + $0x25c] ss:$12 sps:$4 sm:$0xff]  }
  0x39   : > { %3358 = vmatprep.subr.bf16.mxu1 %v3904_v16  ;;  %v3934_v16 = vld [vmem:[%s5335_s1 + $0x274] ss:$12 sps:$4 sm:$0xff]  }
  0x3b   : > { %1497 = vmatpush1.bf16.msra.mxu0 %v3873_v54  ;;  %v4504_v54 = vpack.c.bf16 %v375_v49, %v368_v48  ;;  %v350_v48 = vld [vmem:[%s4291_s19 + $0x210] sm:$0xff]  ;;  %v3979_v49 = vld [vmem:[%s5335_s1 + $0x380] ss:$12 sps:$4 sm:$0xff]  }
  0x3c   : > { %1498 = vmatprep.subr.bf16.mxu0 %v3874_v55  ;;  %3359 = vmatpush3.bf16.msra.mxu1 %v3905_v17  ;;  %v300_v17 = vld [vmem:[%s4291_s19 + $0x80] sm:$0xff] }
  0x3d   : > { %3360 = vmatprep.subr.bf16.mxu1 %v3909_v24 }
  0x3e   : > { %1975 = vmatmul.mubr.bf16.gmra.mrb[8].mxu1 %v4367_v62 }
  0x3f   : > { %1499 = vmatpush1.bf16.msra.mxu0 %v3876_v63  ;;  %1982 = vmatprep.mubr.bf16.mxu1 %v4375_v1  ;;  %v4528_v63 = vpack.c.bf16 %v389_v59, %v382_v58  ;;  %v3952_v58 = vld [vmem:[%s5335_s1 + $0x304] ss:$12 sps:$4 sm:$0xff]  }
  0x40   : > { %1500 = vmatprep.subr.bf16.mxu0 %v3877_v0  ;;  %3361 = vmatpush3.bf16.msra.mxu1 %v3910_v25  ;;  %v3923_v0 = vld [vmem:[%s5335_s1 + $0x22c] ss:$12 sps:$4 sm:$0xff]   ;;  %v342_v59 = vld [vmem:[%s4291_s19 + $0x1d0] sm:$0xff] }
  0x41   : > { %3362 = vmatprep.subr.bf16.mxu1 %v3914_v29  ;;  %v3937_v25 = vld [vmem:[%s5335_s1 + $0x28c] ss:$12 sps:$4 sm:$0xff]   ;;  %v3968_v29 = vld [vmem:[%s5335_s1 + $0x410] ss:$12 sps:$4 sm:$0xff]  }
  0x43   : > { %1501 = vmatpush1.bf16.msra.mxu0 %v3879_v3  ;;  %v3928_v3 = vld [vmem:[%s5335_s1 + $0x244] ss:$12 sps:$4 sm:$0xff]  }
  0x44   : > { %1502 = vmatprep.subr.bf16.mxu0 %v3880_v5  ;;  %3363 = vmatpush3.bf16.msra.mxu1 %v3915_v31  ;;  %v293_v5 = vld [vmem:[%s4291_s19 + $0x48] sm:$0xff]  ;;  %v314_v31 = vld [vmem:[%s4291_s19 + $0xf0] sm:$0xff] }
  0x45   : > { %3364 = vmatprep.subr.bf16.mxu1 %v3919_v38  ;;  %v4555_v10 = vpack.c.bf16 %v293_v5, %v286_v4  ;;  %v3955_v4 = vld [vmem:[%s5335_s1 + $0x318] ss:$12 sps:$4 sm:$0xff]   ;;  %v3962_v5 = vld [vmem:[%s5335_s1 + $0x334] ss:$12 sps:$4 sm:$0xff]  }
  0x46   : > { %1983 = vmatmul.mubr.bf16.gmra.mrb[12].mxu1 %v4401_v12 }
  0x47   : > { %1503 = vmatpush1.bf16.msra.mxu0 %v3882_v13  ;;  %1990 = vmatprep.mubr.bf16.mxu1 %v4409_v15  ;;  %v4563_v13 = vpack.c.bf16 %v308_v8, %v301_v6  ;;  %v356_v6 = vld [vmem:[%s4291_s19 + $0x240] sm:$0xff]  ;;  %v371_v8 = vld [vmem:[%s4291_s19 + $0x2b8] sm:$0xff] }
  0x48   : > { %1504 = vmatprep.subr.bf16.mxu0 %v3883_v14  ;;  %3365 = vmatpush3.bf16.msra.mxu1 %v3920_v39  ;;  %v3954_v14 = vld [vmem:[%s5335_s1 + $0x308] ss:$12 sps:$4 sm:$0xff]  }
  0x49   : > { %v3943_v39 = vld [vmem:[%s5335_s1 + $0x2bc] ss:$12 sps:$4 sm:$0xff]  }
  0x4b   : > { %1505 = vmatpush1.bf16.msra.mxu0 %v3885_v18  ;;  %v307_v18 = vld [vmem:[%s4291_s19 + $0xb8] sm:$0xff] }
  0x4c   : > { %1587 = vmatprep.subr.bf16.mxu0 %v3888_v19  ;;  %v315_v19 = vld [vmem:[%s4291_s19 + $0xf8] sm:$0xff]  ;;  %v4591_v24 = vpack.c.bf16 %v307_v18, %v300_v17  ;;  %v377_v17 = vld [vmem:[%s4291_s19 + $0x2e8] sm:$0xff] }
  0x4d   : > { %v385_v18 = vld [vmem:[%s4291_s19 + $0x328] sm:$0xff] }
  0x4e   : > { %1507 = vmatmul.mubr.bf16.vlgmr.msra.gmra.mrb[0].mxu0 %v4317_v40  ;;  %1991 = vmatmul.mubr.bf16.gmra.mrb[16].mxu1 %v4438_v27  ;;  %v3896_v40 = vld [vmem:[%s5335_s1 + $0x1b0] ss:$12 sps:$4 sm:$0xff]  }
  0x4f   : > { %1588 = vmatpush1.bf16.msra.mxu0 %v3886_v26  ;;  %1516 = vmatprep.mubr.bf16.mxu0 %v4325_v43  ;;  %v3924_v43 = vld [vmem:[%s5335_s1 + $0x2f0] ss:$12 sps:$4 sm:$0xff]   ;;  %v3935_v26 = vld [vmem:[%s5335_s1 + $0x288] ss:$12 sps:$4 sm:$0xff]  }
  0x50   : > { %1589 = vmatprep.subr.bf16.mxu0 %v3893_v28  ;;  %1998 = vmatprep.mubr.bf16.mxu1 %v4446_v30  ;;  %v3964_v28 = vld [vmem:[%s5335_s1 + $0x338] ss:$12 sps:$4 sm:$0xff]  }
  0x51   : > { %3366 = vmatprep.subr.bf16.mxu1 %v3924_v43  ;;  %v3978_v43 = vld [vmem:[%s5335_s1 + $0x440] ss:$12 sps:$4 sm:$0xff]  }
  0x52   : > { %3367 = vmatpush3.bf16.msra.mxu1 %v3925_v45  ;;  %v328_v45 = vld [vmem:[%s4291_s19 + $0x160] sm:$0xff] }
  0x53   : > { %1590 = vmatpush1.bf16.msra.mxu0 %v3891_v32  ;;  %3416 = vmatprep.subr.bf16.mxu1 %v3953_v7  ;;  %v321_v32 = vld [vmem:[%s4291_s19 + $0x128] sm:$0xff]  ;;  %v363_v7 = vld [vmem:[%s4291_s19 + $0x278] sm:$0xff] }
  0x54   : > { %1591 = vmatprep.subr.bf16.mxu0 %v3898_v33  ;;  %v329_v33 = vld [vmem:[%s4291_s19 + $0x168] sm:$0xff]  ;;  %v4627_v38 = vpack.c.bf16 %v321_v32, %v314_v31  ;;  %v296_v31 = vld [vmem:[%s4291_s19 + $0x60] sm:$0xff] }
  0x56   : > { %1517 = vmatmul.mubr.bf16.gmra.mrb[4].mxu0 %v4339_v50  ;;  %1999 = vmatmul.mubr.bf16.gmra.mrb[20].mxu1 %v4474_v41  ;;  %v383_v50 = vld [vmem:[%s4291_s19 + $0x318] sm:$0xff] }
  0x57   : > { %1592 = vmatpush1.bf16.msra.mxu0 %v3896_v40  ;;  %1526 = vmatprep.mubr.bf16.mxu0 %v4347_v53  ;;  %v3913_v53 = vld [vmem:[%s5335_s1 + $0x1fc] ss:$12 sps:$4 sm:$0xff]   ;;  %v4509_v55 = vpack.c.bf16 %v390_v51, %v383_v50  ;;  %v3941_v40 = vld [vmem:[%s5335_s1 + $0x2b8] ss:$12 sps:$4 sm:$0xff]  }
  0x58   : > { %1593 = vmatprep.subr.bf16.mxu0 %v3903_v42  ;;  %2006 = vmatprep.mubr.bf16.mxu1 %v4482_v44  ;;  %v3974_v42 = vld [vmem:[%s5335_s1 + $0x368] ss:$12 sps:$4 sm:$0xff]   ;;  %v3983_v50 = vld [vmem:[%s5335_s1 + $0x458] ss:$12 sps:$4 sm:$0xff]   ;;  %v3944_v51 = vld [vmem:[%s5335_s1 + $0x2d0] ss:$12 sps:$4 sm:$0xff]  }
  0x5b   : > { %1594 = vmatpush1.bf16.msra.mxu0 %v3901_v46  ;;  %v335_v46 = vld [vmem:[%s4291_s19 + $0x198] sm:$0xff] }
  0x5c   : > { %1595 = vmatprep.subr.bf16.mxu0 %v3908_v47  ;;  %v343_v47 = vld [vmem:[%s4291_s19 + $0x1d8] sm:$0xff] }
  0x5e   : > { %1527 = vmatmul.mubr.bf16.gmra.mrb[8].mxu0 %v4367_v62  ;;  %2007 = vmatmul.mubr.bf16.gmra.mrb[24].mxu1 %v4504_v54  ;;  %v3916_v62 = vld [vmem:[%s5335_s1 + $0x210] ss:$12 sps:$4 sm:$0xff]  }
  0x5f   : > { %1596 = vmatpush1.bf16.msra.mxu0 %v3906_v52  ;;  %1536 = vmatprep.mubr.bf16.mxu0 %v4375_v1  ;;  %v4533_v1 = vpack.c.bf16 %v294_v61, %v287_v60  ;;  %v4663_v52 = vpack.c.bf16 %v335_v46, %v328_v45  ;;  %v349_v60 = vld [vmem:[%s4291_s19 + $0x208] sm:$0xff]  ;;  %v3998_v46 = vld [vmem:[%s5335_s1 + $0x3f4] ss:$12 sps:$4 sm:$0xff]  }
  0x60   : > { %1597 = vmatprep.subr.bf16.mxu0 %v3913_v53  ;;  %2014 = vmatprep.mubr.bf16.mxu1 %v4509_v55  ;;  %v4668_v53 = vpack.c.bf16 %v350_v48, %v343_v47  ;;  %v357_v61 = vld [vmem:[%s4291_s19 + $0x248] sm:$0xff]  ;;  %v302_v47 = vld [vmem:[%s4291_s19 + $0x90] sm:$0xff] }
  0x61   : > { %v309_v48 = vld [vmem:[%s4291_s19 + $0xc8] sm:$0xff] }
  0x63   : > { %1598 = vmatpush1.bf16.msra.mxu0 %v3911_v56  ;;  %v3988_v56 = vld [vmem:[%s5335_s1 + $0x470] ss:$12 sps:$4 sm:$0xff]  }
  0x64   : > { %1599 = vmatprep.subr.bf16.mxu0 %v3918_v57  ;;  %v3947_v57 = vld [vmem:[%s5335_s1 + $0x2e8] ss:$12 sps:$4 sm:$0xff]  }
  0x66   : > { %1537 = vmatmul.mubr.bf16.gmra.mrb[12].mxu0 %v4401_v12  ;;  %2015 = vmatmul.mubr.bf16.gmra.mrb[28].mxu1 %v4528_v63  ;;  %v3929_v12 = vld [vmem:[%s5335_s1 + $0x258] ss:$12 sps:$4 sm:$0xff]  }
  0x67   : > { %1600 = vmatpush1.bf16.msra.mxu0 %v3916_v62  ;;  %1546 = vmatprep.mubr.bf16.mxu0 %v4409_v15  ;;  %v3958_v15 = vld [vmem:[%s5335_s1 + $0x3e0] ss:$12 sps:$4 sm:$0xff]   ;;  %v3989_v62 = vld [vmem:[%s5335_s1 + $0x3b0] ss:$12 sps:$4 sm:$0xff]  }
  0x68   : > { %1601 = vmatprep.subr.bf16.mxu0 %v3923_v0  ;;  %2055 = vmatprep.mubr.bf16.mxu1 %v4533_v1  ;;  %v3950_v0 = vld [vmem:[%s5335_s1 + $0x300] ss:$12 sps:$4 sm:$0xff]  }
  0x6b   : > { %1602 = vmatpush1.bf16.msra.mxu0 %v3921_v2  ;;  %v3957_v2 = vld [vmem:[%s5335_s1 + $0x31c] ss:$12 sps:$4 sm:$0xff]  }
  0x6c   : > { %1603 = vmatprep.subr.bf16.mxu0 %v3928_v3 }
  0x6e   : > { %1547 = vmatmul.mubr.bf16.gmra.mrb[16].mxu0 %v4438_v27  ;;  %2056 = vmatmul.mubr.bf16.vlgmr.msra.gmra.mrb[32].mxu1 %v4555_v10  ;;  %v4599_v27 = vpack.c.bf16 %v322_v20, %v315_v19  ;;  %v392_v19 = vld [vmem:[%s4291_s19 + $0x360] sm:$0xff] }
  0x6f   : > { %1604 = vmatpush1.bf16.msra.mxu0 %v3926_v9  ;;  %1556 = vmatprep.mubr.bf16.mxu0 %v4446_v30  ;;  %v3940_v30 = vld [vmem:[%s5335_s1 + $0x2a4] ss:$12 sps:$4 sm:$0xff]   ;;  %v3970_v20 = vld [vmem:[%s5335_s1 + $0x360] ss:$12 sps:$4 sm:$0xff]  }
  0x70   : > { %1605 = vmatprep.subr.bf16.mxu0 %v3931_v11  ;;  %2063 = vmatprep.mubr.bf16.mxu1 %v4563_v13  ;;  %v378_v9 = vld [vmem:[%s4291_s19 + $0x2f0] sm:$0xff]  ;;  %v4720_v11 = vpack.c.bf16 %v363_v7, %v356_v6  ;;  %v352_v6 = vld [vmem:[%s4291_s19 + $0x220] sm:$0xff] }
  0x71   : > { %3417 = vmatpush3.bf16.msra.mxu1 %v3954_v14  ;;  %v3965_v14 = vld [vmem:[%s5335_s1 + $0x348] ss:$12 sps:$4 sm:$0xff]   ;;  %v4008_v7 = vld [vmem:[%s5335_s1 + $0x450] ss:$12 sps:$4 sm:$0xff]  }
  0x72   : > { %3418 = vmatprep.subr.bf16.mxu1 %v3958_v15  ;;  %v3972_v15 = vld [vmem:[%s5335_s1 + $0x364] ss:$12 sps:$4 sm:$0xff]  }
  0x73   : > { %1606 = vmatpush1.bf16.msra.mxu0 %v3929_v12  ;;  %v3967_v12 = vld [vmem:[%s5335_s1 + $0x34c] ss:$12 sps:$4 sm:$0xff]  }
  0x74   : > { %1607 = vmatprep.subr.bf16.mxu0 %v3934_v16  ;;  %v370_v16 = vld [vmem:[%s4291_s19 + $0x2b0] sm:$0xff] }
  0x75   : > { %3419 = vmatpush3.bf16.msra.mxu1 %v3959_v21  ;;  %v4744_v21 = vpack.c.bf16 %v377_v17, %v370_v16  ;;  %v366_v16 = vld [vmem:[%s4291_s19 + $0x290] sm:$0xff]  ;;  %v4014_v17 = vld [vmem:[%s5335_s1 + $0x480] ss:$12 sps:$4 sm:$0xff]  }
  0x76   : > { %1557 = vmatmul.mubr.bf16.gmra.mrb[20].mxu0 %v4474_v41  ;;  %3420 = vmatprep.subr.bf16.mxu1 %v3963_v22  ;;  %v4635_v41 = vpack.c.bf16 %v336_v34, %v329_v33  ;;  %v3977_v22 = vld [vmem:[%s5335_s1 + $0x37c] ss:$12 sps:$4 sm:$0xff]   ;;  %v3987_v33 = vld [vmem:[%s5335_s1 + $0x3ac] ss:$12 sps:$4 sm:$0xff]  }
  0x77   : > { %2064 = vmatmul.mubr.bf16.gmra.mrb[36].mxu1 %v4591_v24  ;;  %1608 = vmatpush1.bf16.msra.mxu0 %v3932_v23  ;;  %v4749_v23 = vpack.c.bf16 %v392_v19, %v385_v18  ;;  %v3985_v34 = vld [vmem:[%s5335_s1 + $0x3a8] ss:$12 sps:$4 sm:$0xff]  }
  0x78   : > { %1609 = vmatprep.subr.bf16.mxu0 %v3937_v25  ;;  %1566 = vmatprep.mubr.bf16.mxu0 %v4482_v44  ;;  %v3946_v44 = vld [vmem:[%s5335_s1 + $0x2d4] ss:$12 sps:$4 sm:$0xff]   ;;  %v3975_v25 = vld [vmem:[%s5335_s1 + $0x378] ss:$12 sps:$4 sm:$0xff]  }
  0x79   : > { %2071 = vmatprep.mubr.bf16.mxu1 %v4599_v27  ;;  %3421 = vmatpush3.bf16.msra.mxu1 %v3964_v28  ;;  %v391_v28 = vld [vmem:[%s4291_s19 + $0x358] sm:$0xff] }
  0x7a   : > { %3422 = vmatprep.subr.bf16.mxu1 %v3968_v29  ;;  %v3980_v29 = vld [vmem:[%s5335_s1 + $0x390] ss:$12 sps:$4 sm:$0xff]  }
  0x7b   : > { %1610 = vmatpush1.bf16.msra.mxu0 %v3935_v26  ;;  %v3982_v26 = vld [vmem:[%s5335_s1 + $0x394] ss:$12 sps:$4 sm:$0xff]  }
  0x7c   : > { %1611 = vmatprep.subr.bf16.mxu0 %v3940_v30  ;;  %v289_v30 = vld [vmem:[%s4291_s19 + $0x28] sm:$0xff] }
  0x7d   : > { %3423 = vmatpush3.bf16.msra.mxu1 %v3969_v35  ;;  %v4779_v35 = vpack.c.bf16 %v296_v31, %v289_v30 }
  0x7e   : > { %1567 = vmatmul.mubr.bf16.gmra.mrb[24].mxu0 %v4504_v54  ;;  %3424 = vmatprep.subr.bf16.mxu1 %v3973_v36  ;;  %v3949_v54 = vld [vmem:[%s5335_s1 + $0x2ec] ss:$12 sps:$4 sm:$0xff]   ;;  %v3992_v36 = vld [vmem:[%s5335_s1 + $0x3c4] ss:$12 sps:$4 sm:$0xff]  }
  0x7f   : > { %2072 = vmatmul.mubr.bf16.gmra.mrb[40].mxu1 %v4627_v38  ;;  %1612 = vmatpush1.bf16.msra.mxu0 %v3938_v37  ;;  %v288_v37 = vld [vmem:[%s4291_s19 + $0x20] sm:$0xff] }
  0x80   : > { %1613 = vmatprep.subr.bf16.mxu0 %v3943_v39  ;;  %1576 = vmatprep.mubr.bf16.mxu0 %v4509_v55  ;;  %v3984_v55 = vld [vmem:[%s5335_s1 + $0x398] ss:$12 sps:$4 sm:$0xff]  }
  0x81   : > { %2079 = vmatprep.mubr.bf16.mxu1 %v4635_v41  ;;  %3425 = vmatpush3.bf16.msra.mxu1 %v3974_v42  ;;  %v303_v39 = vld [vmem:[%s4291_s19 + $0x98] sm:$0xff] }
  0x82   : > { %3426 = vmatprep.subr.bf16.mxu1 %v3978_v43  ;;  %v3995_v42 = vld [vmem:[%s5335_s1 + $0x3dc] ss:$12 sps:$4 sm:$0xff]  }
  0x83   : > { %1614 = vmatpush1.bf16.msra.mxu0 %v3941_v40  ;;  %v310_v40 = vld [vmem:[%s4291_s19 + $0xd0] sm:$0xff] }
  0x84   : > { %1615 = vmatprep.subr.bf16.mxu0 %v3946_v44  ;;  %v3993_v44 = vld [vmem:[%s5335_s1 + $0x3d8] ss:$12 sps:$4 sm:$0xff]   ;;  %v4803_v45 = vpack.c.bf16 %v310_v40, %v303_v39  ;;  %v318_v40 = vld [vmem:[%s4291_s19 + $0x110] sm:$0xff] }
  0x85   : > { %3427 = vmatpush3.bf16.msra.mxu1 %v3979_v49  ;;  %v317_v49 = vld [vmem:[%s4291_s19 + $0x108] sm:$0xff]  ;;  %v311_v39 = vld [vmem:[%s4291_s19 + $0xd8] sm:$0xff] }
  0x86   : > { %1577 = vmatmul.mubr.bf16.gmra.mrb[28].mxu0 %v4528_v63  ;;  %3428 = vmatprep.subr.bf16.mxu1 %v3983_v50  ;;  %v364_v63 = vld [vmem:[%s4291_s19 + $0x280] sm:$0xff] }
  0x87   : > { %2080 = vmatmul.mubr.bf16.gmra.mrb[44].mxu1 %v4663_v52  ;;  %1616 = vmatpush1.bf16.msra.mxu0 %v3944_v51  ;;  %v4701_v3 = vpack.c.bf16 %v364_v63, %v357_v61  ;;  %v324_v50 = vld [vmem:[%s4291_s19 + $0x140] sm:$0xff]  ;;  %v3996_v51 = vld [vmem:[%s5335_s1 + $0x3f0] ss:$12 sps:$4 sm:$0xff]  }
  0x88   : > { %1617 = vmatprep.subr.bf16.mxu0 %v3949_v54  ;;  %1619 = vmatprep.mubr.bf16.mxu0 %v4533_v1  ;;  %v4696_v1 = vpack.c.bf16 %v349_v60, %v342_v59  ;;  %v4001_v54 = vld [vmem:[%s5335_s1 + $0x40c] ss:$12 sps:$4 sm:$0xff]   ;;  %v338_v60 = vld [vmem:[%s4291_s19 + $0x1b0] sm:$0xff]  ;;  %v4007_v63 = vld [vmem:[%s5335_s1 + $0x43c] ss:$12 sps:$4 sm:$0xff]  }
  0x89   : > { %2087 = vmatprep.mubr.bf16.mxu1 %v4668_v53  ;;  %3429 = vmatpush3.bf16.msra.mxu1 %v3984_v55  ;;  %v3999_v55 = vld [vmem:[%s5335_s1 + $0x408] ss:$12 sps:$4 sm:$0xff]   ;;  %v331_v59 = vld [vmem:[%s4291_s19 + $0x178] sm:$0xff]  ;;  %v4002_v61 = vld [vmem:[%s5335_s1 + $0x420] ss:$12 sps:$4 sm:$0xff]  }
  0x8a   : > { %3430 = vmatprep.subr.bf16.mxu1 %v3988_v56  ;;  %v4004_v56 = vld [vmem:[%s5335_s1 + $0x424] ss:$12 sps:$4 sm:$0xff]  }
  0x8b   : > { %1618 = vmatpush1.bf16.msra.mxu0 %v3947_v57  ;;  %v316_v57 = vld [vmem:[%s4291_s19 + $0x100] sm:$0xff] }
  0x8c   : > { %1700 = vmatprep.subr.bf16.mxu0 %v3952_v58  ;;  %v323_v58 = vld [vmem:[%s4291_s19 + $0x138] sm:$0xff] }
  0x8d   : > { %3431 = vmatpush3.bf16.msra.mxu1 %v3989_v62  ;;  %v414_v62 = vpack.c.bf16 %v323_v58, %v316_v57  ;;  %v395_v57 = vld [vmem:[%s4291_s19 + $0x378] sm:$0xff] }
  0x8e   : > { %1620 = vmatmul.mubr.bf16.vlgmr.msra.gmra.mrb[0].mxu0 %v4555_v10  ;;  %v3960_v10 = vld [vmem:[%s5335_s1 + $0x330] ss:$12 sps:$4 sm:$0xff]  }
  0x8f   : > { %2088 = vmatmul.mubr.bf16.gmra.mrb[48].mxu1 %v4696_v1  ;;  %1701 = vmatpush1.bf16.msra.mxu0 %v3950_v0  ;;  %v422_v0 = vpack.c.bf16 %v338_v60, %v331_v59 }
  0x90   : > { %1702 = vmatprep.subr.bf16.mxu0 %v3957_v2  ;;  %1629 = vmatprep.mubr.bf16.mxu0 %v4563_v13  ;;  %v4725_v13 = vpack.c.bf16 %v378_v9, %v371_v8  ;;  %v4010_v2 = vld [vmem:[%s5335_s1 + $0x454] ss:$12 sps:$4 sm:$0xff]   ;;  %v4013_v9 = vld [vmem:[%s5335_s1 + $0x46c] ss:$12 sps:$4 sm:$0xff]  }
  0x91   : > { %2095 = vmatprep.mubr.bf16.mxu1 %v4701_v3 }
  0x93   : > { %1703 = vmatpush1.bf16.msra.mxu0 %v3955_v4  ;;  %v337_v4 = vld [vmem:[%s4291_s19 + $0x1a8] sm:$0xff] }
  0x94   : > { %1704 = vmatprep.subr.bf16.mxu0 %v3962_v5  ;;  %v345_v5 = vld [vmem:[%s4291_s19 + $0x1e8] sm:$0xff] }
  0x96   : > { %1630 = vmatmul.mubr.bf16.gmra.mrb[4].mxu0 %v4591_v24  ;;  %v4017_v24 = vld [vmem:[%s5335_s1 + $0x488] ss:$12 sps:$4 sm:$0xff]  }
  0x97   : > { %2096 = vmatmul.mubr.bf16.gmra.mrb[52].mxu1 %v4720_v11  ;;  %1705 = vmatpush1.bf16.msra.mxu0 %v3960_v10  ;;  %v429_v10 = vpack.c.bf16 %v352_v6, %v345_v5 }
  0x98   : > { %1706 = vmatprep.subr.bf16.mxu0 %v3967_v12  ;;  %1639 = vmatprep.mubr.bf16.mxu0 %v4599_v27  ;;  %v384_v27 = vld [vmem:[%s4291_s19 + $0x320] sm:$0xff] }
  0x99   : > { %2103 = vmatprep.mubr.bf16.mxu1 %v4725_v13  ;;  %3579 = vmatprep.subr.bf16.mxu1 %v4017_v24  ;;  %v4771_v32 = vpack.c.bf16 %v391_v28, %v384_v27  ;;  %v4016_v12 = vld [vmem:[%s5335_s1 + $0x484] ss:$12 sps:$4 sm:$0xff]   ;;  %v379_v27 = vld [vmem:[%s4291_s19 + $0x2f8] sm:$0xff] }
  0x9a   : > { %v387_v28 = vld [vmem:[%s4291_s19 + $0x338] sm:$0xff] }
  0x9b   : > { %1707 = vmatpush1.bf16.msra.mxu0 %v3965_v14  ;;  %v351_v14 = vld [vmem:[%s4291_s19 + $0x218] sm:$0xff] }
  0x9c   : > { %1708 = vmatprep.subr.bf16.mxu0 %v3972_v15  ;;  %v359_v15 = vld [vmem:[%s4291_s19 + $0x258] sm:$0xff] }
  0x9d   : > { %v436_v19 = vpack.c.bf16 %v366_v16, %v359_v15 }
  0x9e   : > { %1640 = vmatmul.mubr.bf16.gmra.mrb[8].mxu0 %v4627_v38  ;;  %v295_v38 = vld [vmem:[%s4291_s19 + $0x58] sm:$0xff] }
  0x9f   : > { %2104 = vmatmul.mubr.bf16.gmra.mrb[56].mxu1 %v4744_v21  ;;  %1709 = vmatpush1.bf16.msra.mxu0 %v3970_v20  ;;  %v4798_v43 = vpack.c.bf16 %v295_v38, %v288_v37  ;;  %v358_v20 = vld [vmem:[%s4291_s19 + $0x250] sm:$0xff]  ;;  %v304_v38 = vld [vmem:[%s4291_s19 + $0xa0] sm:$0xff] }
  0xa0   : > { %1710 = vmatprep.subr.bf16.mxu0 %v3977_v22  ;;  %1649 = vmatprep.mubr.bf16.mxu0 %v4635_v41  ;;  %v3990_v41 = vld [vmem:[%s5335_s1 + $0x3c0] ss:$12 sps:$4 sm:$0xff]  }
  0xa1   : > { %2111 = vmatprep.mubr.bf16.mxu1 %v4749_v23  ;;  %v373_v22 = vld [vmem:[%s4291_s19 + $0x2c8] sm:$0xff] }
  0xa3   : > { %1711 = vmatpush1.bf16.msra.mxu0 %v3975_v25 }
  0xa4   : > { %1712 = vmatprep.subr.bf16.mxu0 %v3982_v26  ;;  %v372_v26 = vld [vmem:[%s4291_s19 + $0x2c0] sm:$0xff] }
  0xa5   : > { %v442_v30 = vpack.c.bf16 %v379_v27, %v372_v26 }
  0xa6   : > { %1650 = vmatmul.mubr.bf16.gmra.mrb[12].mxu0 %v4663_v52  ;;  %v4819_v52 = vpack.c.bf16 %v309_v48, %v302_v47  ;;  %v353_v47 = vld [vmem:[%s4291_s19 + $0x228] sm:$0xff] }
  0xa7   : > { %2112 = vmatmul.mubr.bf16.gmra.mrb[60].mxu1 %v4771_v32  ;;  %1713 = vmatpush1.bf16.msra.mxu0 %v3980_v29  ;;  %v394_v29 = vld [vmem:[%s4291_s19 + $0x370] sm:$0xff] }
  0xa8   : > { %1714 = vmatprep.subr.bf16.mxu0 %v3987_v33  ;;  %1659 = vmatprep.mubr.bf16.mxu0 %v4668_v53  ;;  %v4824_v53 = vpack.c.bf16 %v324_v50, %v317_v49  ;;  %v450_v31 = vpack.c.bf16 %v394_v29, %v387_v28  ;;  %v393_v33 = vld [vmem:[%s4291_s19 + $0x368] sm:$0xff]  ;;  %v360_v50 = vld [vmem:[%s4291_s19 + $0x260] sm:$0xff] }
  0xa9   : > { %2152 = vmatprep.mubr.bf16.mxu1 %v4779_v35 }
  0xab   : > { %1715 = vmatpush1.bf16.msra.mxu0 %v3985_v34  ;;  %v290_v34 = vld [vmem:[%s4291_s19 + $0x30] sm:$0xff] }
  0xac   : > { %1716 = vmatprep.subr.bf16.mxu0 %v3992_v36 }
  0xae   : > { %1660 = vmatmul.mubr.bf16.gmra.mrb[16].mxu0 %v4696_v1  ;;  %v4005_v1 = vld [vmem:[%s5335_s1 + $0x438] ss:$12 sps:$4 sm:$0xff]  }
  0xaf   : > { %2153 = vmatmul.mubr.bf16.vlgmr.msra.gmra.mrb[64].mxu1 %v4798_v43  ;;  %1717 = vmatpush1.bf16.msra.mxu0 %v3990_v41  ;;  %v325_v41 = vld [vmem:[%s4291_s19 + $0x148] sm:$0xff] }
  0xb0   : > { %1718 = vmatprep.subr.bf16.mxu0 %v3995_v42  ;;  %1669 = vmatprep.mubr.bf16.mxu0 %v4701_v3  ;;  %v330_v3 = vld [vmem:[%s4291_s19 + $0x170] sm:$0xff]  ;;  %v409_v42 = vpack.c.bf16 %v311_v39, %v304_v38 }
  0xb1   : > { %2160 = vmatprep.mubr.bf16.mxu1 %v4803_v45  ;;  %3580 = vmatpush3.bf16.msra.mxu1 %v4017_v24  ;;  %v421_v8 = vpack.c.bf16 %v337_v4, %v330_v3 }
  0xb3   : > { %1719 = vmatpush1.bf16.msra.mxu0 %v3993_v44  ;;  %v332_v44 = vld [vmem:[%s4291_s19 + $0x180] sm:$0xff] }
  0xb4   : > { %1720 = vmatprep.subr.bf16.mxu0 %v3998_v46  ;;  %v346_v46 = vld [vmem:[%s4291_s19 + $0x1f0] sm:$0xff] }
  0xb5   : > { %v4906_v49 = vpack.c.bf16 %v353_v47, %v346_v46 }
  0xb6   : > { %1670 = vmatmul.mubr.bf16.gmra.mrb[20].mxu0 %v4720_v11  ;;  %v4011_v11 = vld [vmem:[%s5335_s1 + $0x468] ss:$12 sps:$4 sm:$0xff]  }
  0xb7   : > { %2161 = vmatmul.mubr.bf16.gmra.mrb[68].mxu1 %v4819_v52  ;;  %1721 = vmatpush1.bf16.msra.mxu0 %v3996_v51  ;;  %v367_v51 = vld [vmem:[%s4291_s19 + $0x298] sm:$0xff] }
  0xb8   : > { %1722 = vmatprep.subr.bf16.mxu0 %v4001_v54  ;;  %1679 = vmatprep.mubr.bf16.mxu0 %v4725_v13  ;;  %v344_v13 = vld [vmem:[%s4291_s19 + $0x1e0] sm:$0xff]  ;;  %v381_v54 = vld [vmem:[%s4291_s19 + $0x308] sm:$0xff] }
  0xb9   : > { %2168 = vmatprep.mubr.bf16.mxu1 %v4824_v53  ;;  %v428_v18 = vpack.c.bf16 %v351_v14, %v344_v13 }
  0xbb   : > { %1723 = vmatpush1.bf16.msra.mxu0 %v3999_v55 }
  0xbc   : > { %1724 = vmatprep.subr.bf16.mxu0 %v4004_v56  ;;  %v388_v56 = vld [vmem:[%s4291_s19 + $0x340] sm:$0xff] }
  0xbd   : > { %v4925_v59 = vpack.c.bf16 %v395_v57, %v388_v56 }
  0xbe   : > { %1680 = vmatmul.mubr.bf16.gmra.mrb[24].mxu0 %v4744_v21  ;;  %v365_v21 = vld [vmem:[%s4291_s19 + $0x288] sm:$0xff] }
  0xbf   : > { %2169 = vmatmul.mubr.bf16.gmra.mrb[72].mxu1 %v414_v62  ;;  %1725 = vmatpush1.bf16.msra.mxu0 %v4002_v61  ;;  %v435_v24 = vpack.c.bf16 %v365_v21, %v358_v20 }
  0xc0   : > { %1726 = vmatprep.subr.bf16.mxu0 %v4007_v63  ;;  %1689 = vmatprep.mubr.bf16.mxu0 %v4749_v23  ;;  %v380_v23 = vld [vmem:[%s4291_s19 + $0x300] sm:$0xff] }
  0xc1   : > { %2176 = vmatprep.mubr.bf16.mxu1 %v422_v0  ;;  %v443_v25 = vpack.c.bf16 %v380_v23, %v373_v22 }
  0xc3   : > { %1727 = vmatpush1.bf16.msra.mxu0 %v4005_v1  ;;  %v4108_v1 = vmov 0  }
  0xc4   : > { %1728 = vmatprep.subr.bf16.mxu0 %v4010_v2 }
  0xc6   : > { %1690 = vmatmul.mubr.bf16.gmra.mrb[28].mxu0 %v4771_v32  ;;  %v386_v32 = vld [vmem:[%s4291_s19 + $0x330] sm:$0xff] }
  0xc7   : > { %2177 = vmatmul.mubr.bf16.gmra.mrb[76].mxu1 %v421_v8  ;;  %1729 = vmatpush1.bf16.msra.mxu0 %v4008_v7  ;;  %v449_v36 = vpack.c.bf16 %v393_v33, %v386_v32  ;;  %v650_v32 = vlaneseq }
  0xc8   : > { %1730 = vmatprep.subr.bf16.mxu0 %v4013_v9  ;;  %1732 = vmatprep.mubr.bf16.mxu0 %v4779_v35  ;;  %v297_v35 = vld [vmem:[%s4291_s19 + $0x68] sm:$0xff] }
  0xc9   : > { %2184 = vmatprep.mubr.bf16.mxu1 %v429_v10  ;;  %v402_v37 = vpack.c.bf16 %v297_v35, %v290_v34  ;;  %v4961_v38 = vshrl.u32 %v650_v32, 7 }
  0xcb   : > { %1731 = vmatpush1.bf16.msra.mxu0 %v4011_v11 }
  0xcc   : > { %1813 = vmatprep.subr.bf16.mxu0 %v4016_v12 }
  0xce   : > { %1733 = vmatmul.mubr.bf16.vlgmr.msra.gmra.mrb[0].mxu0 %v4798_v43  ;;  %v416_v43 = vpack.c.bf16 %v325_v41, %v318_v40  ;;  %v660_v40 = vsub.s32 2, %v4961_v38 }
  0xcf   : > { %2185 = vmatmul.mubr.bf16.gmra.mrb[80].mxu1 %v428_v18  ;;  %1814 = vmatpush1.bf16.msra.mxu0 %v4014_v17 }
  0xd0   : > { %1742 = vmatprep.mubr.bf16.mxu0 %v4803_v45  ;;  %2192 = vmatprep.mubr.bf16.mxu1 %v436_v19  ;;  %v339_v45 = vld [vmem:[%s4291_s19 + $0x1b8] sm:$0xff] }
  0xd1   : > { %v423_v48 = vpack.c.bf16 %v339_v45, %v332_v44 }
  0xd6   : > { %1743 = vmatmul.mubr.bf16.gmra.mrb[4].mxu0 %v4819_v52  ;;  %v374_v52 = vld [vmem:[%s4291_s19 + $0x2d0] sm:$0xff]  ;;  %s272_s19 = sand.u32 1, %s4098_s25  }
  0xd7   : > { %2193 = vmatmul.mubr.bf16.gmra.mrb[84].mxu1 %v435_v24  ;;  %1752 = vmatprep.mubr.bf16.mxu0 %v4824_v53  ;;  %v4915_v53 = vpack.c.bf16 %v367_v51, %v360_v50  ;;  %v4917_v55 = vpack.c.bf16 %v381_v54, %v374_v52  ;;  %v4019_v54 = vld [vmem:[%s5337_s3 + $0x88] sm:$0xff]   ;;  %s3072_s20 = sshll.u32 %s272_s19, 7  ;;  %s5293_s28 = scalar_lea.sflag [#allocation3], %s272_s19 }
  0xd8   : > { %2200 = vmatprep.mubr.bf16.mxu1 %v443_v25  ;;  %s5264_s21 = scalar_lea.vmem [#allocation2], %s3072_s20 }
  0xd9   : > { %s3006_s16 = sshll.u32 %s5264_s21, 4  ;;  %s5286_s16 = int_to_ptr.vmem [resolvable:$true] %s3006_s16 }
  0xda   : > { %s4044_s29 = scalar_lea.vmem %s5286_s16, 2048  ;;  %p4051_p0 = scmp.lt.s32.totalorder %s5286_s16, %s4049_s9 }
  0xdb   : > { %p4045_p11 = scmp.ne.s32.totalorder %s5286_s16, %s4044_s29  ;;  %p4052_p1 = scmp.lt.s32.totalorder %s4050_s13, %s4044_s29 }
  0xdd   : > { %p4046_p12 = pnand %p4045_p11, %p4190_p5  ;;  %p4053_p2 = por %p4052_p1, %p4051_p0 }
  0xde   : > { %1753 = vmatmul.mubr.bf16.gmra.mrb[8].mxu0 %v414_v62 }
  0xdf   : > { %2201 = vmatmul.mubr.bf16.gmra.mrb[88].mxu1 %v442_v30  ;;  %1762 = vmatprep.mubr.bf16.mxu0 %v422_v0  ;;  %p4047_p13 = pneg %p4046_p12 }
  0xe0   : > { %2208 = vmatprep.mubr.bf16.mxu1 %v450_v31 }
  0xe1   : > { %p4054_p3 = pnand %p4053_p2, %p4047_p13 }
  0xe6   : > { %1763 = vmatmul.mubr.bf16.gmra.mrb[12].mxu0 %v421_v8 }
  0xe7   : > { %2209 = vmatmul.mubr.bf16.gmra.mrb[92].mxu1 %v449_v36  ;;  %1772 = vmatprep.mubr.bf16.mxu0 %v429_v10 }
  0xe8   : > { %3581 = vmatprep.mubr.msk.bf16.mxu1 %vm1449_vm0, %v402_v37 }
  0xee   : > { %1773 = vmatmul.mubr.bf16.gmra.mrb[16].mxu0 %v428_v18 }
  0xef   : > { %3582 = vmatmul.mubr.msk.bf16.vlgmr.msra.gmra.mrb[96].mxu1 %vm1449_vm0, %v409_v42  ;;  %1782 = vmatprep.mubr.bf16.mxu0 %v436_v19 }
  0xf0   : > { %3585 = vmatprep.mubr.msk.bf16.mxu1 %vm1449_vm0, %v416_v43 }
  0xf6   : > { %1783 = vmatmul.mubr.bf16.gmra.mrb[20].mxu0 %v435_v24 }
  0xf7   : > { %3586 = vmatmul.mubr.msk.bf16.gmra.mrb[100].mxu1 %vm1449_vm0, %v423_v48  ;;  %1792 = vmatprep.mubr.bf16.mxu0 %v443_v25 }
  0xf8   : > { %3589 = vmatprep.mubr.msk.bf16.mxu1 %vm1449_vm0, %v4906_v49 }
  0xfe   : > { %1793 = vmatmul.mubr.bf16.gmra.mrb[24].mxu0 %v442_v30 }
  0xff   : > { %3590 = vmatmul.mubr.msk.bf16.gmra.mrb[104].mxu1 %vm1449_vm0, %v4915_v53  ;;  %1802 = vmatprep.mubr.bf16.mxu0 %v450_v31 }
 0x100   : > { %3593 = vmatprep.mubr.msk.bf16.mxu1 %vm1449_vm0, %v4917_v55 }
 0x101   : > { %v3304_v58 = vpop.f32.mrb[0].mxu1 }
 0x102   : > { %v3305_v60 = vpop.f32.mrb[1].mxu1 }
 0x103   : > { %v4927_v61 = vadd.f32 %v3305_v60, %v3304_v58  ;;  %v3307_v62 = vpop.f32.mrb[2].mxu1 }
 0x104   : > { %v3308_v63 = vpop.f32.mrb[3].mxu1 }
 0x105   : > { %v4929_v0 = vadd.f32 %v3308_v63, %v3307_v62 }
 0x106   : > { %1803 = vmatmul.mubr.bf16.gmra.mrb[28].mxu0 %v449_v36 }
 0x107   : > { %3594 = vmatmul.mubr.msk.bf16.gmra.mrb[108].mxu1 %vm1449_vm0, %v4925_v59  ;;  %1845 = vmatprep.mubr.bf16.mxu0 %v4108_v1 }
 0x109   : > { %v3310_v2 = vpop.f32.mrb[4].mxu1 }
 0x10a   : > { %v3311_v3 = vpop.f32.mrb[5].mxu1 }
 0x10b   : > { %v4933_v4 = vadd.f32 %v3311_v3, %v3310_v2  ;;  %v3313_v5 = vpop.f32.mrb[6].mxu1 }
 0x10c   : > { %v3314_v6 = vpop.f32.mrb[7].mxu1 }
 0x10d   : > { %v4936_v7 = vadd.f32 %v3314_v6, %v3313_v5 }
 0x10e   : > { %3222 = vmatmul.mubr.msk.bf16.vlgmr.msra.gmra.mrb[0].mxu0 %vm1449_vm0, %v402_v37 }
 0x10f   : > { %1855 = vmatprep.mubr.bf16.mxu0 %v4108_v1 }
 0x111   : > { %v3316_v8 = vpop.f32.mrb[8].mxu1 }
 0x112   : > { %v3317_v9 = vpop.f32.mrb[9].mxu1 }
 0x113   : > { %v4938_v10 = vadd.f32 %v3317_v9, %v3316_v8  ;;  %v3319_v11 = vpop.f32.mrb[10].mxu1  ;;  %v4022_v8 = vld [vmem:[%s5337_s3] sm:$0xff]  }
 0x114   : > { %v3320_v12 = vpop.f32.mrb[11].mxu1 }
 0x115   : > { %v4941_v13 = vadd.f32 %v3320_v12, %v3319_v11  ;;  %v4023_v12 = vld [vmem:[%s5337_s3 + $0x48] sm:$0xff]  }
 0x116   : > { %3223 = vmatmul.mubr.msk.bf16.gmra.mrb[4].mxu0 %vm1449_vm0, %v409_v42  ;;  %v4971_v42 = vld [vmem:[%s5336_s2] sm:$0x7] }
 0x117   : > { %1865 = vmatprep.mubr.bf16.mxu0 %v4108_v1  ;;  %v4976_v47 = vrot.slane %v4971_v42, %v660_v40 }
 0x119   : > { %v3322_v14 = vpop.f32.mrb[12].mxu1  ;;  %v1961_v50 = vadd.f32 %v4927_v61, %v4976_v47  ;;  %v4020_v61 = vld [vmem:[%s5337_s3 + $0x90] sm:$0x3f]   ;;  %v1972_v3 = vadd.f32 %v4936_v7, %v4976_v47  ;;  %v4024_v7 = vld [vmem:[%s5337_s3 + $0x8] sm:$0xff]  }
 0x11a   : > { %v3323_v15 = vpop.f32.mrb[13].mxu1  ;;  %v2571_v63 = vsel %vm2569_vm1, %v4020_v61, 0 }
 0x11b   : > { %v4943_v16 = vadd.f32 %v3323_v15, %v3322_v14  ;;  %v3325_v17 = vpop.f32.mrb[14].mxu1  ;;  %v1977_v15 = vadd.f32 %v4938_v10, %v4976_v47 }
 0x11c   : > { %v3326_v18 = vpop.f32.mrb[15].mxu1 }
 0x11d   : > { %v4946_v19 = vadd.f32 %v3326_v18, %v3325_v17 }
 0x11e   : > { %3224 = vmatmul.mubr.msk.bf16.gmra.mrb[8].mxu0 %vm1449_vm0, %v416_v43 }
 0x11f   : > { %1875 = vmatprep.mubr.bf16.mxu0 %v4108_v1  ;;  %v1988_v40 = vadd.f32 %v4946_v19, %v4976_v47  ;;  %v4032_v19 = vld [vmem:[%s5337_s3 + $0x28] sm:$0xff]  }
 0x121   : > { %v3328_v20 = vpop.f32.mrb[16].mxu1 }
 0x122   : > { %v3329_v21 = vpop.f32.mrb[17].mxu1 }
 0x123   : > { %v4948_v22 = vadd.f32 %v3329_v21, %v3328_v20  ;;  %v3331_v23 = vpop.f32.mrb[18].mxu1  ;;  %v4025_v20 = vld [vmem:[%s5337_s3 + $0x50] sm:$0xff]   ;;  %v1980_v21 = vadd.f32 %v4941_v13, %v4976_v47  ;;  %v4028_v13 = vld [vmem:[%s5337_s3 + $0x18] sm:$0xff]  }
 0x124   : > { %v3332_v24 = vpop.f32.mrb[19].mxu1 }
 0x125   : > { %v4951_v25 = vadd.f32 %v3332_v24, %v3331_v23 }
 0x126   : > { %3225 = vmatmul.mubr.msk.bf16.gmra.mrb[12].mxu0 %vm1449_vm0, %v423_v48 }
 0x127   : > { %1885 = vmatprep.mubr.bf16.mxu0 %v4108_v1 }
 0x129   : > { %v3334_v26 = vpop.f32.mrb[20].mxu1 }
 0x12a   : > { %v3335_v27 = vpop.f32.mrb[21].mxu1 }
 0x12b   : > { %v4953_v28 = vadd.f32 %v3335_v27, %v3334_v26  ;;  %v3337_v29 = vpop.f32.mrb[22].mxu1  ;;  %v4026_v26 = vld [vmem:[%s5337_s3 + $0x10] sm:$0xff]  }
 0x12c   : > { %v3338_v30 = vpop.f32.mrb[23].mxu1 }
 0x12d   : > { %v4957_v31 = vadd.f32 %v3338_v30, %v3337_v29  ;;  %v4027_v30 = vld [vmem:[%s5337_s3 + $0x58] sm:$0xff]  }
 0x12e   : > { %3226 = vmatmul.mubr.msk.bf16.gmra.mrb[16].mxu0 %vm1449_vm0, %v4906_v49  ;;  %v4018_v49 = vld [vmem:[%s5337_s3 + $0x80] sm:$0xff]  }
 0x12f   : > { %1895 = vmatprep.mubr.bf16.mxu0 %v4108_v1  ;;  %3597 = vmatprep.subr.bf16.mxu0 %v4018_v49 }
 0x130   : > { %3598 = vmatpush3.bf16.msra.mxu0 %v4018_v49 }
 0x131   : > { %v3340_v33 = vpop.f32.mrb[24].mxu1  ;;  %3599 = vmatprep.subr.bf16.mxu0 %v4019_v54 }
 0x132   : > { %v3341_v34 = vpop.f32.mrb[25].mxu1 }
 0x133   : > { %v4959_v35 = vadd.f32 %v3341_v34, %v3340_v33  ;;  %v3343_v36 = vpop.f32.mrb[26].mxu1  ;;  %v1985_v33 = vadd.f32 %v4943_v16, %v4976_v47 }
 0x134   : > { %v3344_v37 = vpop.f32.mrb[27].mxu1  ;;  %3600 = vmatpush3.bf16.msra.mxu0 %v4019_v54 }
 0x135   : > { %v4965_v39 = vadd.f32 %v3344_v37, %v3343_v36  ;;  %3777 = vmatprep.subr.msk.bf16.mxu0 %vm2569_vm1, %v4020_v61  ;;  %v4029_v37 = vld [vmem:[%s5337_s3 + $0x60] sm:$0xff]   ;;  %v4034_v61 = vld [vmem:[%s5337_s3 + $0x30] sm:$0xff]  }
 0x136   : > { %3227 = vmatmul.mubr.msk.bf16.gmra.mrb[20].mxu0 %vm1449_vm0, %v4915_v53  ;;  %v1964_v53 = vadd.f32 %v4929_v0, %v4976_v47  ;;  %v1969_v0 = vadd.f32 %v4933_v4, %v4976_v47 }
 0x137   : > { %1905 = vmatprep.mubr.bf16.mxu0 %v4108_v1 }
 0x138   : > { %3602 = vmatpush3.bf16.msra.mxu0 %v2571_v63 }
 0x139   : > { %v3346_v41 = vpop.f32.mrb[28].mxu1 }
 0x13a   : > { %v3347_v43 = vpop.f32.mrb[29].mxu1 }
 0x13b   : > { %v4973_v44 = vadd.f32 %v3347_v43, %v3346_v41  ;;  %v3349_v45 = vpop.f32.mrb[30].mxu1 }
 0x13c   : > { %v3350_v46 = vpop.f32.mrb[31].mxu1 }
 0x13d   : > { %v4980_v48 = vadd.f32 %v3350_v46, %v3349_v45  ;;  %v4030_v45 = vld [vmem:[%s5337_s3 + $0x20] sm:$0xff]  }
 0x13e   : > { %3228 = vmatmul.mubr.msk.bf16.gmra.mrb[24].mxu0 %vm1449_vm0, %v4917_v55 }
 0x13f   : > { %1915 = vmatprep.mubr.bf16.mxu0 %v4108_v1 }
 0x141   : > { %v3368_v51 = vpop.f32.mrb[32].mxu1 }
 0x142   : > { %v3369_v52 = vpop.f32.mrb[33].mxu1 }
 0x143   : > { %v3370_v55 = vadd.f32 %v3369_v52, %v3368_v51  ;;  %v3371_v56 = vpop.f32.mrb[34].mxu1  ;;  %v1993_v52 = vadd.f32 %v4948_v22, %v4976_v47 }
 0x144   : > { %v3372_v57 = vpop.f32.mrb[35].mxu1 }
 0x145   : > { %v4992_v58 = vadd.f32 %v3370_v55, %v1961_v50  ;;  %v3373_v60 = vadd.f32 %v3372_v57, %v3371_v56  ;;  %v4031_v50 = vld [vmem:[%s5337_s3 + $0x68] sm:$0xff]   ;;  %v4033_v55 = vld [vmem:[%s5337_s3 + $0x70] sm:$0xff]   ;;  %v1996_v56 = vadd.f32 %v4951_v25, %v4976_v47  ;;  %v4036_v25 = vld [vmem:[%s5337_s3 + $0x38] sm:$0xff]  }
 0x146   : > { %3229 = vmatmul.mubr.msk.bf16.gmra.mrb[28].mxu0 %vm1449_vm0, %v4925_v59  ;;  %v4021_v59 = vld [vmem:[%s5337_s3 + $0x40] sm:$0xff]  }
 0x147   : > { %v4999_v62 = vadd.f32 %v3373_v60, %v1964_v53  ;;  %3489 = vmatprep.subr.bf16.mxu1 %v4021_v59  ;;  %v2001_v59 = vadd.f32 %v4953_v28, %v4976_v47  ;;  %v2012_v28 = vadd.f32 %v4965_v39, %v4976_v47 }
 0x148   : > { %3490 = vmatpush3.bf16.msra.mxu1 %v4022_v8 }
 0x149   : > { %3491 = vmatprep.subr.bf16.mxu1 %v4023_v12 }
 0x14a   : > { %v3374_v1 = vpop.f32.mrb[36].mxu1 }
 0x14b   : > { %v3375_v2 = vpop.f32.mrb[37].mxu1 }
 0x14c   : > { %v3376_v5 = vadd.f32 %v3375_v2, %v3374_v1  ;;  %v3377_v6 = vpop.f32.mrb[38].mxu1  ;;  %3492 = vmatpush3.bf16.msra.mxu1 %v4024_v7  ;;  %v4035_v1 = vld [vmem:[%s5337_s3 + $0x78] sm:$0xff]  }
 0x14d   : > { %v3378_v9 = vpop.f32.mrb[39].mxu1  ;;  %3493 = vmatprep.subr.bf16.mxu1 %v4025_v20 }
 0x14e   : > { %v5011_v11 = vadd.f32 %v3376_v5, %v1969_v0  ;;  %v3379_v4 = vadd.f32 %v3378_v9, %v3377_v6  ;;  %v2004_v6 = vadd.f32 %v4957_v31, %v4976_v47 }
 0x150   : > { %v5016_v14 = vadd.f32 %v3379_v4, %v1972_v3  ;;  %3494 = vmatpush3.bf16.msra.mxu1 %v4026_v26 }
 0x151   : > { %3495 = vmatprep.subr.bf16.mxu1 %v4027_v30 }
 0x152   : > { %v3380_v17 = vpop.f32.mrb[40].mxu1 }
 0x153   : > { %v3381_v18 = vpop.f32.mrb[41].mxu1 }
 0x154   : > { %v3382_v23 = vadd.f32 %v3381_v18, %v3380_v17  ;;  %v3383_v24 = vpop.f32.mrb[42].mxu1  ;;  %3496 = vmatpush3.bf16.msra.mxu1 %v4028_v13  ;;  %v2009_v17 = vadd.f32 %v4959_v35, %v4976_v47  ;;  %v2020_v35 = vadd.f32 %v4980_v48, %v4976_v47 }
 0x155   : > { %v3384_v27 = vpop.f32.mrb[43].mxu1  ;;  %3497 = vmatprep.subr.bf16.mxu1 %v4029_v37 }
 0x156   : > { %v5031_v29 = vadd.f32 %v3382_v23, %v1977_v15  ;;  %v3385_v10 = vadd.f32 %v3384_v27, %v3383_v24 }
 0x158   : > { %v5036_v32 = vadd.f32 %v3385_v10, %v1980_v21  ;;  %3498 = vmatpush3.bf16.msra.mxu1 %v4030_v45  ;;  %v2017_v10 = vadd.f32 %v4973_v44, %v4976_v47 }
 0x159   : > { %3499 = vmatprep.subr.bf16.mxu1 %v4031_v50 }
 0x15a   : > { %v3386_v34 = vpop.f32.mrb[44].mxu1 }
 0x15b   : > { %v3387_v36 = vpop.f32.mrb[45].mxu1 }
 0x15c   : > { %v3388_v41 = vadd.f32 %v3387_v36, %v3386_v34  ;;  %v3389_v43 = vpop.f32.mrb[46].mxu1  ;;  %3500 = vmatpush3.bf16.msra.mxu1 %v4032_v19 }
 0x15d   : > { %v3390_v46 = vpop.f32.mrb[47].mxu1  ;;  %3501 = vmatprep.subr.bf16.mxu1 %v4033_v55 }
 0x15e   : > { %v5051_v49 = vadd.f32 %v3388_v41, %v1985_v33  ;;  %v3391_v16 = vadd.f32 %v3390_v46, %v3389_v43 }
 0x160   : > { %v5056_v51 = vadd.f32 %v3391_v16, %v1988_v40  ;;  %3502 = vmatpush3.bf16.msra.mxu1 %v4034_v61 }
 0x161   : > { %3503 = vmatprep.subr.bf16.mxu1 %v4035_v1 }
 0x162   : > { %v3392_v54 = vpop.f32.mrb[48].mxu1 }
 0x163   : > { %v3393_v53 = vpop.f32.mrb[49].mxu1 }
 0x164   : > { %v3394_v57 = vadd.f32 %v3393_v53, %v3392_v54  ;;  %v3395_v60 = vpop.f32.mrb[50].mxu1  ;;  %3504 = vmatpush3.bf16.msra.mxu1 %v4036_v25 }
 0x165   : > { %v3396_v63 = vpop.f32.mrb[51].mxu1 }
 0x166   : > { %v5071_v0 = vadd.f32 %v3394_v57, %v1993_v52  ;;  %v3397_v22 = vadd.f32 %v3396_v63, %v3395_v60 }
 0x168   : > { %v5076_v2 = vadd.f32 %v3397_v22, %v1996_v56 }
 0x16a   : > { %v3398_v3 = vpop.f32.mrb[52].mxu1 }
 0x16b   : > { %v3399_v5 = vpop.f32.mrb[53].mxu1 }
 0x16c   : > { %v3400_v8 = vadd.f32 %v3399_v5, %v3398_v3  ;;  %v3401_v9 = vpop.f32.mrb[54].mxu1 }
 0x16d   : > { %v3402_v4 = vpop.f32.mrb[55].mxu1 }
 0x16e   : > { %v5085_v12 = vadd.f32 %v3400_v8, %v2001_v59  ;;  %v3403_v7 = vadd.f32 %v3402_v4, %v3401_v9 }
 0x170   : > { %v5087_v15 = vadd.f32 %v3403_v7, %v2004_v6 }
 0x172   : > { %v3404_v18 = vpop.f32.mrb[56].mxu1 }
 0x173   : > { %v3405_v20 = vpop.f32.mrb[57].mxu1 }
 0x174   : > { %v3406_v21 = vadd.f32 %v3405_v20, %v3404_v18  ;;  %v3407_v23 = vpop.f32.mrb[58].mxu1 }
 0x175   : > { %v3408_v24 = vpop.f32.mrb[59].mxu1 }
 0x176   : > { %v5093_v31 = vadd.f32 %v3406_v21, %v2009_v17  ;;  %v3409_v26 = vadd.f32 %v3408_v24, %v3407_v23 }
 0x178   : > { %v5095_v27 = vadd.f32 %v3409_v26, %v2012_v28 }
 0x17a   : > { %v3410_v30 = vpop.f32.mrb[60].mxu1 }
 0x17b   : > { %v3411_v13 = vpop.f32.mrb[61].mxu1 }
 0x17c   : > { %v3412_v33 = vadd.f32 %v3411_v13, %v3410_v30  ;;  %v3413_v34 = vpop.f32.mrb[62].mxu1 }
 0x17d   : > { %v3414_v36 = vpop.f32.mrb[63].mxu1 }
 0x17e   : > { %v5101_v39 = vadd.f32 %v3412_v33, %v2017_v10  ;;  %v3415_v37 = vadd.f32 %v3414_v36, %v3413_v34 }
 0x180   : > { %v5103_v40 = vadd.f32 %v3415_v37, %v2020_v35 }
 0x182   : > { %v3432_v41 = vpop.f32.mrb[64].mxu1 }
 0x183   : > { %v3433_v43 = vpop.f32.mrb[65].mxu1 }
 0x184   : > { %v3434_v45 = vadd.f32 %v3433_v43, %v3432_v41  ;;  %v3435_v46 = vpop.f32.mrb[66].mxu1 }
 0x185   : > { %v3436_v16 = vpop.f32.mrb[67].mxu1 }
 0x186   : > { %v3437_v50 = vadd.f32 %v3436_v16, %v3435_v46  ;;  %v2155_v44 = vadd.f32 %v3434_v45, %v4992_v58 }
 0x188   : > { %v5107_v19 = vadd.f32 %v3437_v50, %v4999_v62 }
 0x18a   : > { %v3438_v47 = vpop.f32.mrb[68].mxu1 }
 0x18b   : > { %v3439_v48 = vpop.f32.mrb[69].mxu1 }
 0x18c   : > { %v3440_v52 = vadd.f32 %v3439_v48, %v3438_v47  ;;  %v3441_v54 = vpop.f32.mrb[70].mxu1 }
 0x18d   : > { %v3442_v53 = vpop.f32.mrb[71].mxu1 }
 0x18e   : > { %v3443_v55 = vadd.f32 %v3442_v53, %v3441_v54  ;;  %v2163_v56 = vadd.f32 %v3440_v52, %v5011_v11 }
 0x190   : > { %v2166_v57 = vadd.f32 %v3443_v55, %v5016_v14 }
 0x192   : > { %v3444_v60 = vpop.f32.mrb[72].mxu1 }
 0x193   : > { %v3445_v61 = vpop.f32.mrb[73].mxu1 }
 0x194   : > { %v3446_v63 = vadd.f32 %v3445_v61, %v3444_v60  ;;  %v3447_v22 = vpop.f32.mrb[74].mxu1 }
 0x195   : > { %v3448_v1 = vpop.f32.mrb[75].mxu1 }
 0x196   : > { %v3449_v25 = vadd.f32 %v3448_v1, %v3447_v22  ;;  %v2171_v58 = vadd.f32 %v3446_v63, %v5031_v29 }
 0x198   : > { %v5113_v62 = vadd.f32 %v3449_v25, %v5036_v32 }
 0x19a   : > { %v3450_v59 = vpop.f32.mrb[76].mxu1 }
 0x19b   : > { %v3451_v3 = vpop.f32.mrb[77].mxu1 }
 0x19c   : > { %v3452_v5 = vadd.f32 %v3451_v3, %v3450_v59  ;;  %v3453_v6 = vpop.f32.mrb[78].mxu1 }
 0x19d   : > { %v3454_v8 = vpop.f32.mrb[79].mxu1 }
 0x19e   : > { %v3455_v9 = vadd.f32 %v3454_v8, %v3453_v6  ;;  %v2179_v11 = vadd.f32 %v3452_v5, %v5051_v49 }
 0x1a0   : > { %v2182_v14 = vadd.f32 %v3455_v9, %v5056_v51 }
 0x1a2   : > { %v3456_v4 = vpop.f32.mrb[80].mxu1 }
 0x1a3   : > { %v3457_v7 = vpop.f32.mrb[81].mxu1 }
 0x1a4   : > { %v3458_v17 = vadd.f32 %v3457_v7, %v3456_v4  ;;  %v3459_v18 = vpop.f32.mrb[82].mxu1 }
 0x1a5   : > { %v3460_v20 = vpop.f32.mrb[83].mxu1 }
 0x1a6   : > { %v3461_v28 = vadd.f32 %v3460_v20, %v3459_v18  ;;  %v2187_v29 = vadd.f32 %v3458_v17, %v5071_v0 }
 0x1a8   : > { %v5119_v32 = vadd.f32 %v3461_v28, %v5076_v2 }
 0x1aa   : > { %v3462_v21 = vpop.f32.mrb[84].mxu1 }
 0x1ab   : > { %v3463_v23 = vpop.f32.mrb[85].mxu1 }
 0x1ac   : > { %v3464_v24 = vadd.f32 %v3463_v23, %v3462_v21  ;;  %v3465_v26 = vpop.f32.mrb[86].mxu1 }
 0x1ad   : > { %v3466_v10 = vpop.f32.mrb[87].mxu1 }
 0x1ae   : > { %v3467_v30 = vadd.f32 %v3466_v10, %v3465_v26  ;;  %v2195_v49 = vadd.f32 %v3464_v24, %v5085_v12 }
 0x1b0   : > { %v2198_v51 = vadd.f32 %v3467_v30, %v5087_v15 }
 0x1b2   : > { %v3468_v13 = vpop.f32.mrb[88].mxu1 }
 0x1b3   : > { %v3469_v35 = vpop.f32.mrb[89].mxu1 }
 0x1b4   : > { %v3470_v33 = vadd.f32 %v3469_v35, %v3468_v13  ;;  %v3471_v34 = vpop.f32.mrb[90].mxu1 }
 0x1b5   : > { %v3472_v36 = vpop.f32.mrb[91].mxu1 }
 0x1b6   : > { %v3473_v37 = vadd.f32 %v3472_v36, %v3471_v34  ;;  %v2203_v0 = vadd.f32 %v3470_v33, %v5093_v31  ;;  %v656_v33 = vsub.s32 1, %v4961_v38 }
 0x1b8   : > { %v5125_v2 = vadd.f32 %v3473_v37, %v5095_v27 }
 0x1ba   : > { %v3474_v41 = vpop.f32.mrb[92].mxu1 }
 0x1bb   : > { %v3475_v43 = vpop.f32.mrb[93].mxu1 }
 0x1bc   : > { %v3476_v45 = vadd.f32 %v3475_v43, %v3474_v41  ;;  %v3477_v46 = vpop.f32.mrb[94].mxu1 }
 0x1bd   : > { %v3478_v16 = vpop.f32.mrb[95].mxu1 }
 0x1be   : > { %v3479_v50 = vadd.f32 %v3478_v16, %v3477_v46  ;;  %v2211_v12 = vadd.f32 %v3476_v45, %v5101_v39  ;;  %v5145_v46 = vrot.slane %v4971_v42, %v656_v33 }
 0x1c0   : > { %v2214_v15 = vadd.f32 %v3479_v50, %v5103_v40 }
 0x1c2   : > { %v3583_v47 = vpop.f32.mrb[96].mxu1 }
 0x1c3   : > { %v2260_v48 = vadd.f32 %v3583_v47, %v2163_v56  ;;  %v2251_v52 = vpop.f32.mrb[97].mxu1 }
 0x1c4   : > { %v2252_v54 = vadd.f32 %v2251_v52, %v2155_v44  ;;  %v3584_v53 = vpop.f32.mrb[98].mxu1 }
 0x1c5   : > { %v2263_v55 = vadd.f32 %v3584_v53, %v2166_v57  ;;  %v2254_v31 = vpop.f32.mrb[99].mxu1  ;;  %v2322_v60 = vmax.f32 %v2260_v48, 0.0 }
 0x1c6   : > { %v2255_v27 = vadd.f32 %v2254_v31, %v5107_v19  ;;  %v2316_v63 = vmax.f32 %v2252_v54, 0.0 }
 0x1c7   : > { %v2325_v61 = vmax.f32 %v2263_v55, 0.0 }
 0x1c8   : > { %v2319_v22 = vmax.f32 %v2255_v27, 0.0 }
 0x1c9   : > { %v2367_v1 = vpack.c.bf16 %v2325_v61, %v2322_v60 }
 0x1ca   : > { %v2364_v25 = vpack.c.bf16 %v2319_v22, %v2316_v63  ;;  %v3587_v59 = vpop.f32.mrb[100].mxu1 }
 0x1cb   : > { %v2276_v39 = vadd.f32 %v3587_v59, %v2179_v11  ;;  %v2267_v3 = vpop.f32.mrb[101].mxu1 }
 0x1cc   : > { %v2268_v40 = vadd.f32 %v2267_v3, %v2171_v58  ;;  %v3588_v5 = vpop.f32.mrb[102].mxu1  ;;  %3603 = vmatprep.mubr.msk.bf16.mxu0 %vm2544_vm2, %v2364_v25 }
 0x1cd   : > { %v2279_v44 = vadd.f32 %v3588_v5, %v2182_v14  ;;  %v2270_v56 = vpop.f32.mrb[103].mxu1  ;;  %3604 = vmatmul.mubr.msk.bf16.vlgmr.msra.gmra.mrb[32].mxu0 %vm2544_vm2, %v2367_v1  ;;  %v2334_v57 = vmax.f32 %v2276_v39, 0.0 }
 0x1ce   : > { %v2271_v19 = vadd.f32 %v2270_v56, %v5113_v62  ;;  %v2328_v8 = vmax.f32 %v2268_v40, 0.0 }
 0x1cf   : > { %v2337_v6 = vmax.f32 %v2279_v44, 0.0 }
 0x1d0   : > { %v2331_v9 = vmax.f32 %v2271_v19, 0.0 }
 0x1d1   : > { %v2373_v4 = vpack.c.bf16 %v2337_v6, %v2334_v57 }
 0x1d2   : > { %v2370_v7 = vpack.c.bf16 %v2331_v9, %v2328_v8  ;;  %v3591_v17 = vpop.f32.mrb[104].mxu1 }
 0x1d3   : > { %v2292_v18 = vadd.f32 %v3591_v17, %v2195_v49  ;;  %v2283_v11 = vpop.f32.mrb[105].mxu1  ;;  %v652_v49 = vsub.s32 0, %v4961_v38 }
 0x1d4   : > { %v2284_v20 = vadd.f32 %v2283_v11, %v2187_v29  ;;  %v3592_v58 = vpop.f32.mrb[106].mxu1  ;;  %3607 = vmatprep.mubr.msk.bf16.mxu0 %vm2544_vm2, %v2370_v7 }
 0x1d5   : > { %v2295_v28 = vadd.f32 %v3592_v58, %v2198_v51  ;;  %v2286_v14 = vpop.f32.mrb[107].mxu1  ;;  %3608 = vmatmul.mubr.msk.bf16.gmra.mrb[36].mxu0 %vm2544_vm2, %v2373_v4  ;;  %v2346_v62 = vmax.f32 %v2292_v18, 0.0  ;;  %v5142_v41 = vrot.slane %v4971_v42, %v652_v49 }
 0x1d6   : > { %v2287_v21 = vadd.f32 %v2286_v14, %v5119_v32  ;;  %v2340_v24 = vmax.f32 %v2284_v20, 0.0 }
 0x1d7   : > { %v2349_v23 = vmax.f32 %v2295_v28, 0.0 }
 0x1d8   : > { %v2343_v26 = vmax.f32 %v2287_v21, 0.0 }
 0x1d9   : > { %v2379_v10 = vpack.c.bf16 %v2349_v23, %v2346_v62 }
 0x1da   : > { %v2376_v30 = vpack.c.bf16 %v2343_v26, %v2340_v24  ;;  %v3595_v13 = vpop.f32.mrb[108].mxu1 }
 0x1db   : > { %v2308_v35 = vadd.f32 %v3595_v13, %v2211_v12  ;;  %v2299_v29 = vpop.f32.mrb[109].mxu1 }
 0x1dc   : > { %v2300_v34 = vadd.f32 %v2299_v29, %v2203_v0  ;;  %v3596_v51 = vpop.f32.mrb[110].mxu1  ;;  %3611 = vmatprep.mubr.msk.bf16.mxu0 %vm2544_vm2, %v2376_v30 }
 0x1dd   : > { %v2311_v36 = vadd.f32 %v3596_v51, %v2214_v15  ;;  %v2302_v37 = vpop.f32.mrb[111].mxu1  ;;  %3612 = vmatmul.mubr.msk.bf16.gmra.mrb[40].mxu0 %vm2544_vm2, %v2379_v10  ;;  %v2358_v43 = vmax.f32 %v2308_v35, 0.0 }
 0x1de   : > { %v2303_v32 = vadd.f32 %v2302_v37, %v5125_v2  ;;  %v2352_v16 = vmax.f32 %v2300_v34, 0.0 }
 0x1df   : > { %v2361_v45 = vmax.f32 %v2311_v36, 0.0 }
 0x1e0   : > { %v2355_v38 = vmax.f32 %v2303_v32, 0.0 }
 0x1e1   : > { %v2385_v0 = vpack.c.bf16 %v2361_v45, %v2358_v43  ;;  %v1847_v50 = vpop.f32.mrb[0].mxu0 }
 0x1e2   : > { %v2382_v12 = vpack.c.bf16 %v2355_v38, %v2352_v16  ;;  %v3649_v15 = vadd.f32 %v1847_v50, %v5142_v41  ;;  %v1849_v47 = vpop.f32.mrb[1].mxu0 }
 0x1e3   : > { %v3650_v48 = vadd.f32 %v1849_v47, %v5145_v46  ;;  %v1851_v52 = vpop.f32.mrb[2].mxu0 }
 0x1e4   : > { %v3651_v2 = vadd.f32 %v1851_v52, %v5142_v41  ;;  %3615 = vmatprep.mubr.msk.bf16.mxu0 %vm2544_vm2, %v2382_v12  ;;  %v1853_v54 = vpop.f32.mrb[3].mxu0  ;;  %v2314_v42 = vmax.f32 %v3649_v15, 0.0 }
 0x1e5   : > { %v3652_v53 = vadd.f32 %v1853_v54, %v5145_v46  ;;  %3616 = vmatmul.mubr.msk.bf16.gmra.mrb[44].mxu0 %vm2544_vm2, %v2385_v0  ;;  %v2315_v31 = vmax.f32 %v3650_v48, 0.0 }
 0x1e6   : > { %v2317_v55 = vmax.f32 %v3651_v2, 0.0 }
 0x1e7   : > { %v2318_v27 = vmax.f32 %v3652_v53, 0.0 }
 0x1e8   : > { %v2362_v60 = vpack.c.bf16 %v2317_v55, %v2314_v42 }
 0x1e9   : > { %v2363_v61 = vpack.c.bf16 %v2318_v27, %v2315_v31  ;;  %v1857_v63 = vpop.f32.mrb[4].mxu0 }
 0x1ea   : > { %v3653_v22 = vadd.f32 %v1857_v63, %v5142_v41  ;;  %v1859_v1 = vpop.f32.mrb[5].mxu0 }
 0x1eb   : > { %v3654_v25 = vadd.f32 %v1859_v1, %v5145_v46  ;;  %v1861_v59 = vpop.f32.mrb[6].mxu0  ;;  %2605 = vmatprep.mubr.bf16.mxu1 %v2363_v61 }
 0x1ec   : > { %v3655_v39 = vadd.f32 %v1861_v59, %v5142_v41  ;;  %v1863_v3 = vpop.f32.mrb[7].mxu0  ;;  %2606 = vmatmul.mubr.bf16.vlgmr.msra.gmra.mrb[112].mxu1 %v2362_v60  ;;  %v2320_v5 = vmax.f32 %v3653_v22, 0.0 }
 0x1ed   : > { %v3656_v40 = vadd.f32 %v1863_v3, %v5145_v46  ;;  %v2321_v56 = vmax.f32 %v3654_v25, 0.0 }
 0x1ee   : > { %v2323_v44 = vmax.f32 %v3655_v39, 0.0 }
 0x1ef   : > { %v2324_v19 = vmax.f32 %v3656_v40, 0.0 }
 0x1f0   : > { %v2365_v57 = vpack.c.bf16 %v2323_v44, %v2320_v5 }
 0x1f1   : > { %v2366_v6 = vpack.c.bf16 %v2324_v19, %v2321_v56  ;;  %v1867_v8 = vpop.f32.mrb[8].mxu0 }
 0x1f2   : > { %v3657_v9 = vadd.f32 %v1867_v8, %v5142_v41  ;;  %v1869_v4 = vpop.f32.mrb[9].mxu0 }
 0x1f3   : > { %v3658_v7 = vadd.f32 %v1869_v4, %v5145_v46  ;;  %v1871_v17 = vpop.f32.mrb[10].mxu0  ;;  %2613 = vmatprep.mubr.bf16.mxu1 %v2366_v6 }
 0x1f4   : > { %v3659_v18 = vadd.f32 %v1871_v17, %v5142_v41  ;;  %v1873_v11 = vpop.f32.mrb[11].mxu0  ;;  %2614 = vmatmul.mubr.bf16.gmra.mrb[116].mxu1 %v2365_v57  ;;  %v2326_v58 = vmax.f32 %v3657_v9, 0.0 }
 0x1f5   : > { %v3660_v20 = vadd.f32 %v1873_v11, %v5145_v46  ;;  %v2327_v14 = vmax.f32 %v3658_v7, 0.0 }
 0x1f6   : > { %v2329_v28 = vmax.f32 %v3659_v18, 0.0 }
 0x1f7   : > { %v2330_v21 = vmax.f32 %v3660_v20, 0.0 }
 0x1f8   : > { %v2368_v62 = vpack.c.bf16 %v2329_v28, %v2326_v58 }
 0x1f9   : > { %v2369_v23 = vpack.c.bf16 %v2330_v21, %v2327_v14  ;;  %v1877_v24 = vpop.f32.mrb[12].mxu0 }
 0x1fa   : > { %v3661_v26 = vadd.f32 %v1877_v24, %v5142_v41  ;;  %v1879_v10 = vpop.f32.mrb[13].mxu0 }
 0x1fb   : > { %v3662_v30 = vadd.f32 %v1879_v10, %v5145_v46  ;;  %v1881_v13 = vpop.f32.mrb[14].mxu0  ;;  %2621 = vmatprep.mubr.bf16.mxu1 %v2369_v23 }
 0x1fc   : > { %v3663_v49 = vadd.f32 %v1881_v13, %v5142_v41  ;;  %v1883_v35 = vpop.f32.mrb[15].mxu0  ;;  %2622 = vmatmul.mubr.bf16.gmra.mrb[120].mxu1 %v2368_v62  ;;  %v2332_v33 = vmax.f32 %v3661_v26, 0.0 }
 0x1fd   : > { %v3664_v29 = vadd.f32 %v1883_v35, %v5145_v46  ;;  %v2333_v51 = vmax.f32 %v3662_v30, 0.0 }
 0x1fe   : > { %v2335_v34 = vmax.f32 %v3663_v49, 0.0 }
 0x1ff   : > { %v2336_v36 = vmax.f32 %v3664_v29, 0.0 }
 0x200   : > { %v2371_v37 = vpack.c.bf16 %v2335_v34, %v2332_v33  ;;  %v4037_v33 = vld [vmem:[%s5339_s5] sm:$0xff]   ;;  %v4040_v34 = vld [vmem:[%s5339_s5 + $0x18] sm:$0xff]  }
 0x201   : > { %v2372_v32 = vpack.c.bf16 %v2336_v36, %v2333_v51  ;;  %v1887_v43 = vpop.f32.mrb[16].mxu0  ;;  %3619 = vmatprep.subr.bf16.mxu1 %v4037_v33  ;;  %v4041_v51 = vld [vmem:[%s5339_s5 + $0x20] sm:$0xff]   ;;  %v4042_v36 = vld [vmem:[%s5339_s5 + $0x28] sm:$0xff]  }
 0x202   : > { %v3665_v45 = vadd.f32 %v1887_v43, %v5142_v41  ;;  %v1889_v16 = vpop.f32.mrb[17].mxu0  ;;  %3620 = vmatpush3.bf16.msra.mxu1 %v4037_v33 }
 0x203   : > { %v3666_v38 = vadd.f32 %v1889_v16, %v5145_v46  ;;  %v1891_v0 = vpop.f32.mrb[18].mxu0  ;;  %2629 = vmatprep.mubr.bf16.mxu1 %v2372_v32 }
 0x204   : > { %v3667_v50 = vadd.f32 %v1891_v0, %v5142_v41  ;;  %v1893_v12 = vpop.f32.mrb[19].mxu0  ;;  %2630 = vmatmul.mubr.bf16.gmra.mrb[124].mxu1 %v2371_v37  ;;  %v2338_v47 = vmax.f32 %v3665_v45, 0.0  ;;  %v4043_v37 = vld [vmem:[%s5339_s5 + $0x30] ss:$0 sps:$4 sm:$0x33]  }
 0x205   : > { %v3668_v15 = vadd.f32 %v1893_v12, %v5145_v46  ;;  %v2339_v52 = vmax.f32 %v3666_v38, 0.0  ;;  %v2877_v32 = vsel %vm2875_vm3, %v4043_v37, 0 }
 0x206   : > { %v2341_v48 = vmax.f32 %v3667_v50, 0.0 }
 0x207   : > { %v2342_v2 = vmax.f32 %v3668_v15, 0.0 }
 0x208   : > { %v2374_v54 = vpack.c.bf16 %v2341_v48, %v2338_v47 }
 0x209   : > { %v2375_v53 = vpack.c.bf16 %v2342_v2, %v2339_v52  ;;  %v1897_v42 = vpop.f32.mrb[20].mxu0 }
 0x20a   : > { %v3669_v55 = vadd.f32 %v1897_v42, %v5142_v41  ;;  %v1899_v31 = vpop.f32.mrb[21].mxu0 }
 0x20b   : > { %v3670_v27 = vadd.f32 %v1899_v31, %v5145_v46  ;;  %v1901_v60 = vpop.f32.mrb[22].mxu0  ;;  %2637 = vmatprep.mubr.bf16.mxu1 %v2375_v53 }
 0x20c   : > { %v3671_v61 = vadd.f32 %v1901_v60, %v5142_v41  ;;  %v1903_v63 = vpop.f32.mrb[23].mxu0  ;;  %2638 = vmatmul.mubr.bf16.gmra.mrb[128].mxu1 %v2374_v54  ;;  %v2344_v1 = vmax.f32 %v3669_v55, 0.0 }
 0x20d   : > { %v3672_v22 = vadd.f32 %v1903_v63, %v5145_v46  ;;  %v2345_v59 = vmax.f32 %v3670_v27, 0.0  ;;  %v5223_v27 = vld [vmem:[%s5338_s4] ss:$0 sm:$0xff] }
 0x20e   : > { %v2347_v25 = vmax.f32 %v3671_v61, 0.0 }
 0x20f   : > { %v2348_v39 = vmax.f32 %v3672_v22, 0.0 }
 0x210   : > { %v2377_v3 = vpack.c.bf16 %v2347_v25, %v2344_v1 }
 0x211   : > { %v2378_v40 = vpack.c.bf16 %v2348_v39, %v2345_v59  ;;  %v1907_v5 = vpop.f32.mrb[24].mxu0 }
 0x212   : > { %v3673_v44 = vadd.f32 %v1907_v5, %v5142_v41  ;;  %v1909_v56 = vpop.f32.mrb[25].mxu0 }
 0x213   : > { %v3674_v19 = vadd.f32 %v1909_v56, %v5145_v46  ;;  %v1911_v57 = vpop.f32.mrb[26].mxu0  ;;  %2645 = vmatprep.mubr.bf16.mxu1 %v2378_v40 }
 0x214   : > { %v3675_v6 = vadd.f32 %v1911_v57, %v5142_v41  ;;  %v1913_v8 = vpop.f32.mrb[27].mxu0  ;;  %2646 = vmatmul.mubr.bf16.gmra.mrb[132].mxu1 %v2377_v3  ;;  %v2350_v4 = vmax.f32 %v3673_v44, 0.0 }
 0x215   : > { %v3676_v9 = vadd.f32 %v1913_v8, %v5145_v46  ;;  %v2351_v17 = vmax.f32 %v3674_v19, 0.0 }
 0x216   : > { %v2353_v7 = vmax.f32 %v3675_v6, 0.0 }
 0x217   : > { %v2354_v18 = vmax.f32 %v3676_v9, 0.0 }
 0x218   : > { %v2380_v11 = vpack.c.bf16 %v2353_v7, %v2350_v4 }
 0x219   : > { %v2381_v20 = vpack.c.bf16 %v2354_v18, %v2351_v17  ;;  %v1917_v58 = vpop.f32.mrb[28].mxu0 }
 0x21a   : > { %v3677_v28 = vadd.f32 %v1917_v58, %v5142_v41  ;;  %v1919_v14 = vpop.f32.mrb[29].mxu0 }
 0x21b   : > { %v3678_v21 = vadd.f32 %v1919_v14, %v5145_v46  ;;  %v1921_v62 = vpop.f32.mrb[30].mxu0  ;;  %2653 = vmatprep.mubr.bf16.mxu1 %v2381_v20 }
 0x21c   : > { %v3679_v23 = vadd.f32 %v1921_v62, %v5142_v41  ;;  %v1923_v24 = vpop.f32.mrb[31].mxu0  ;;  %2654 = vmatmul.mubr.bf16.gmra.mrb[136].mxu1 %v2380_v11  ;;  %v2356_v10 = vmax.f32 %v3677_v28, 0.0  ;;  %v4038_v41 = vld [vmem:[%s5339_s5 + $0x8] sm:$0xff]  }
 0x21d   : > { %v3680_v26 = vadd.f32 %v1923_v24, %v5145_v46  ;;  %v2357_v13 = vmax.f32 %v3678_v21, 0.0  ;;  %3621 = vmatprep.subr.bf16.mxu1 %v4038_v41  ;;  %v4039_v46 = vld [vmem:[%s5339_s5 + $0x10] sm:$0xff]  }
 0x21e   : > { %v2359_v30 = vmax.f32 %v3679_v23, 0.0  ;;  %3622 = vmatpush3.bf16.msra.mxu1 %v4038_v41 }
 0x21f   : > { %v2360_v49 = vmax.f32 %v3680_v26, 0.0  ;;  %3623 = vmatprep.subr.bf16.mxu1 %v4039_v46 }
 0x220   : > { %v2383_v35 = vpack.c.bf16 %v2359_v30, %v2356_v10 }
 0x221   : > { %v2384_v29 = vpack.c.bf16 %v2360_v49, %v2357_v13 }
 0x222   : > { %3624 = vmatpush3.bf16.msra.mxu1 %v4039_v46 }
 0x223   : > { %2661 = vmatprep.mubr.bf16.mxu1 %v2384_v29  ;;  %3625 = vmatprep.subr.bf16.mxu1 %v4040_v34 }
 0x224   : > { %2662 = vmatmul.mubr.bf16.gmra.mrb[140].mxu1 %v2383_v35 }
 0x226   : > { %3626 = vmatpush3.bf16.msra.mxu1 %v4040_v34 }
 0x227   : > { %3627 = vmatprep.subr.bf16.mxu1 %v4041_v51 }
 0x22a   : > { %3628 = vmatpush3.bf16.msra.mxu1 %v4041_v51 }
 0x22b   : > { %3629 = vmatprep.subr.bf16.mxu1 %v4042_v36 }
 0x22e   : > { %3630 = vmatpush3.bf16.msra.mxu1 %v4042_v36 }
 0x22f   : > { %3778 = vmatprep.subr.msk.bf16.mxu1 %vm2875_vm3, %v4043_v37 }
 0x232   : > { %3632 = vmatpush3.bf16.msra.mxu1 %v2877_v32 }
 0x2a0   : > { %v3605_v43 = vpop.f32.mrb[32].mxu0 }
 0x2a1   : > { %v2704_v45 = vpop.f32.mrb[33].mxu0 }
 0x2a2   : > { %v3606_v16 = vpop.f32.mrb[34].mxu0 }
 0x2a3   : > { %v2707_v38 = vpop.f32.mrb[35].mxu0 }
 0x2a8   : > { %v3609_v0 = vpop.f32.mrb[36].mxu0 }
 0x2a9   : > { %v2720_v50 = vpop.f32.mrb[37].mxu0 }
 0x2aa   : > { %v5202_v12 = vpop.f32.mrb[38].mxu0 }
 0x2ab   : > { %v2723_v15 = vpop.f32.mrb[39].mxu0 }
 0x2b0   : > { %v5204_v47 = vpop.f32.mrb[40].mxu0 }
 0x2b1   : > { %v5206_v48 = vpop.f32.mrb[41].mxu0 }
 0x2b2   : > { %v5208_v52 = vpop.f32.mrb[42].mxu0 }
 0x2b3   : > { %v5210_v2 = vpop.f32.mrb[43].mxu0 }
 0x2b8   : > { %v5212_v54 = vpop.f32.mrb[44].mxu0 }
 0x2b9   : > { %v5214_v53 = vpop.f32.mrb[45].mxu0 }
 0x2ba   : > { %v5216_v42 = vpop.f32.mrb[46].mxu0 }
 0x2bb   : > { %v5218_v55 = vpop.f32.mrb[47].mxu0 }
 0x2bf   : > { %v3505_v31 = vpop.f32.mrb[112].mxu1 }
 0x2c0   : > { %v3506_v60 = vpop.f32.mrb[113].mxu1 }
 0x2c1   : > { %v3507_v61 = vadd.f32 %v3506_v60, %v3505_v31  ;;  %v3508_v63 = vpop.f32.mrb[114].mxu1 }
 0x2c2   : > { %v3509_v22 = vpop.f32.mrb[115].mxu1 }
 0x2c3   : > { %v2608_v1 = vadd.f32 %v3507_v61, %v5223_v27  ;;  %v3510_v25 = vadd.f32 %v3509_v22, %v3508_v63 }
 0x2c5   : > { %v2705_v59 = vadd.f32 %v2704_v45, %v2608_v1  ;;  %v2611_v39 = vadd.f32 %v3510_v25, %v5223_v27 }
 0x2c7   : > { %v2708_v3 = vadd.f32 %v2707_v38, %v2611_v39  ;;  %v3511_v40 = vpop.f32.mrb[116].mxu1  ;;  %v2767_v44 = vmax.f32 %v2705_v59, 0.0 }
 0x2c8   : > { %v3512_v5 = vpop.f32.mrb[117].mxu1 }
 0x2c9   : > { %v2768_v56 = vmax.f32 %v2708_v3, 0.0  ;;  %v3513_v19 = vadd.f32 %v3512_v5, %v3511_v40  ;;  %v3514_v57 = vpop.f32.mrb[118].mxu1 }
 0x2ca   : > { %v3515_v6 = vpop.f32.mrb[119].mxu1 }
 0x2cb   : > { %v2783_v8 = vpack.c.bf16 %v2768_v56, %v2767_v44  ;;  %v2616_v9 = vadd.f32 %v3513_v19, %v5223_v27  ;;  %v3516_v4 = vadd.f32 %v3515_v6, %v3514_v57 }
 0x2cd   : > { %v2713_v7 = vadd.f32 %v3605_v43, %v2616_v9  ;;  %v2619_v17 = vadd.f32 %v3516_v4, %v5223_v27  ;;  %3633 = vmatprep.mubr.msk.bf16.mxu1 %vm2850_vm4, %v2783_v8 }
 0x2cf   : > { %v2716_v18 = vadd.f32 %v3606_v16, %v2619_v17  ;;  %v3517_v11 = vpop.f32.mrb[120].mxu1  ;;  %v2769_v58 = vmax.f32 %v2713_v7, 0.0 }
 0x2d0   : > { %v3518_v20 = vpop.f32.mrb[121].mxu1 }
 0x2d1   : > { %v2770_v28 = vmax.f32 %v2716_v18, 0.0  ;;  %v3519_v14 = vadd.f32 %v3518_v20, %v3517_v11  ;;  %v3520_v21 = vpop.f32.mrb[122].mxu1 }
 0x2d2   : > { %v3521_v62 = vpop.f32.mrb[123].mxu1 }
 0x2d3   : > { %v2784_v23 = vpack.c.bf16 %v2770_v28, %v2769_v58  ;;  %v2624_v24 = vadd.f32 %v3519_v14, %v5223_v27  ;;  %v3522_v26 = vadd.f32 %v3521_v62, %v3520_v21 }
 0x2d5   : > { %v2721_v10 = vadd.f32 %v2720_v50, %v2624_v24  ;;  %v2627_v30 = vadd.f32 %v3522_v26, %v5223_v27  ;;  %3634 = vmatmul.mubr.msk.bf16.vlgmr.msra.gmra.mrb[144].mxu1 %vm2850_vm4, %v2784_v23 }
 0x2d7   : > { %v2724_v13 = vadd.f32 %v2723_v15, %v2627_v30  ;;  %v3523_v49 = vpop.f32.mrb[124].mxu1  ;;  %v2771_v29 = vmax.f32 %v2721_v10, 0.0 }
 0x2d8   : > { %v3524_v35 = vpop.f32.mrb[125].mxu1 }
 0x2d9   : > { %v2772_v33 = vmax.f32 %v2724_v13, 0.0  ;;  %v3525_v41 = vadd.f32 %v3524_v35, %v3523_v49  ;;  %v3526_v46 = vpop.f32.mrb[126].mxu1 }
 0x2da   : > { %v3527_v34 = vpop.f32.mrb[127].mxu1 }
 0x2db   : > { %v2785_v51 = vpack.c.bf16 %v2772_v33, %v2771_v29  ;;  %v2632_v36 = vadd.f32 %v3525_v41, %v5223_v27  ;;  %v3528_v37 = vadd.f32 %v3527_v34, %v3526_v46 }
 0x2dd   : > { %v2729_v32 = vadd.f32 %v3609_v0, %v2632_v36  ;;  %v2635_v43 = vadd.f32 %v3528_v37, %v5223_v27  ;;  %3637 = vmatprep.mubr.msk.bf16.mxu1 %vm2850_vm4, %v2785_v51  ;;  %v3266_v51 = vld [vmem:[%s5340_s6] ss:$0 sm:$0xff] }
 0x2df   : > { %v2732_v45 = vadd.f32 %v5202_v12, %v2635_v43  ;;  %v3529_v16 = vpop.f32.mrb[128].mxu1  ;;  %v2773_v50 = vmax.f32 %v2729_v32, 0.0 }
 0x2e0   : > { %v3530_v38 = vpop.f32.mrb[129].mxu1 }
 0x2e1   : > { %v2774_v15 = vmax.f32 %v2732_v45, 0.0  ;;  %v3531_v31 = vadd.f32 %v3530_v38, %v3529_v16  ;;  %v3532_v60 = vpop.f32.mrb[130].mxu1 }
 0x2e2   : > { %v3533_v61 = vpop.f32.mrb[131].mxu1 }
 0x2e3   : > { %v2786_v63 = vpack.c.bf16 %v2774_v15, %v2773_v50  ;;  %v2640_v22 = vadd.f32 %v3531_v31, %v5223_v27  ;;  %v3534_v1 = vadd.f32 %v3533_v61, %v3532_v60 }
 0x2e5   : > { %v2737_v25 = vadd.f32 %v5206_v48, %v2640_v22  ;;  %v2643_v0 = vadd.f32 %v3534_v1, %v5223_v27  ;;  %3638 = vmatmul.mubr.msk.bf16.gmra.mrb[148].mxu1 %vm2850_vm4, %v2786_v63 }
 0x2e7   : > { %v2740_v59 = vadd.f32 %v5210_v2, %v2643_v0  ;;  %v3535_v12 = vpop.f32.mrb[132].mxu1  ;;  %v2775_v3 = vmax.f32 %v2737_v25, 0.0 }
 0x2e8   : > { %v3536_v39 = vpop.f32.mrb[133].mxu1 }
 0x2e9   : > { %v2776_v40 = vmax.f32 %v2740_v59, 0.0  ;;  %v3537_v5 = vadd.f32 %v3536_v39, %v3535_v12  ;;  %v3538_v44 = vpop.f32.mrb[134].mxu1 }
 0x2ea   : > { %v3539_v56 = vpop.f32.mrb[135].mxu1 }
 0x2eb   : > { %v2787_v19 = vpack.c.bf16 %v2776_v40, %v2775_v3  ;;  %v2648_v57 = vadd.f32 %v3537_v5, %v5223_v27  ;;  %v3540_v6 = vadd.f32 %v3539_v56, %v3538_v44 }
 0x2ed   : > { %v2745_v8 = vadd.f32 %v5204_v47, %v2648_v57  ;;  %v2651_v48 = vadd.f32 %v3540_v6, %v5223_v27  ;;  %3641 = vmatprep.mubr.msk.bf16.mxu1 %vm2850_vm4, %v2787_v19 }
 0x2ef   : > { %v2748_v9 = vadd.f32 %v5208_v52, %v2651_v48  ;;  %v3541_v2 = vpop.f32.mrb[136].mxu1  ;;  %v2777_v7 = vmax.f32 %v2745_v8, 0.0 }
 0x2f0   : > { %v3542_v4 = vpop.f32.mrb[137].mxu1 }
 0x2f1   : > { %v2778_v17 = vmax.f32 %v2748_v9, 0.0  ;;  %v3543_v18 = vadd.f32 %v3542_v4, %v3541_v2  ;;  %v3544_v11 = vpop.f32.mrb[138].mxu1 }
 0x2f2   : > { %v3545_v20 = vpop.f32.mrb[139].mxu1 }
 0x2f3   : > { %v2788_v58 = vpack.c.bf16 %v2778_v17, %v2777_v7  ;;  %v2656_v28 = vadd.f32 %v3543_v18, %v5223_v27  ;;  %v3546_v14 = vadd.f32 %v3545_v20, %v3544_v11 }
 0x2f5   : > { %v2753_v21 = vadd.f32 %v5214_v53, %v2656_v28  ;;  %v2659_v47 = vadd.f32 %v3546_v14, %v5223_v27  ;;  %3642 = vmatmul.mubr.msk.bf16.gmra.mrb[152].mxu1 %vm2850_vm4, %v2788_v58 }
 0x2f7   : > { %v2756_v62 = vadd.f32 %v5218_v55, %v2659_v47  ;;  %v3547_v52 = vpop.f32.mrb[140].mxu1  ;;  %v2779_v24 = vmax.f32 %v2753_v21, 0.0 }
 0x2f8   : > { %v3548_v23 = vpop.f32.mrb[141].mxu1 }
 0x2f9   : > { %v2780_v26 = vmax.f32 %v2756_v62, 0.0  ;;  %v3549_v10 = vadd.f32 %v3548_v23, %v3547_v52  ;;  %v3550_v30 = vpop.f32.mrb[142].mxu1 }
 0x2fa   : > { %v3551_v13 = vpop.f32.mrb[143].mxu1 }
 0x2fb   : > { %v2789_v49 = vpack.c.bf16 %v2780_v26, %v2779_v24  ;;  %v2664_v35 = vadd.f32 %v3549_v10, %v5223_v27  ;;  %v3552_v29 = vadd.f32 %v3551_v13, %v3550_v30 }
 0x2fd   : > { %v2761_v53 = vadd.f32 %v5212_v54, %v2664_v35  ;;  %v2667_v33 = vadd.f32 %v3552_v29, %v5223_v27  ;;  %3645 = vmatprep.mubr.msk.bf16.mxu1 %vm2850_vm4, %v2789_v49 }
 0x2ff   : > { %v2764_v55 = vadd.f32 %v5216_v42, %v2667_v33  ;;  %v2781_v41 = vmax.f32 %v2761_v53, 0.0 }
 0x301   : > { %v2782_v46 = vmax.f32 %v2764_v55, 0.0 }
 0x303   : > { %v2790_v34 = vpack.c.bf16 %v2782_v46, %v2781_v41 }
 0x305   : > { %3646 = vmatmul.mubr.msk.bf16.gmra.mrb[156].mxu1 %vm2850_vm4, %v2790_v34 }
 0x3a8   : > { %v3635_v36 = vpop.f32.mrb[144].mxu1 }
 0x3a9   : > { %v2922_v54 = vadd.f32 %v3635_v36, %v3266_v51  ;;  %v2913_v37 = vpop.f32.mrb[145].mxu1 }
 0x3aa   : > { %v2914_v27 = vadd.f32 %v3266_v51, %v2913_v37  ;;  %v3636_v32 = vpop.f32.mrb[146].mxu1 }
 0x3ab   : > { %2978 = vst [vmem:[%s5264_s21 + $0x10] sm:$0xff] %v2922_v54  ;;  %v2925_v42 = vadd.f32 %v3636_v32, %v3266_v51  ;;  %v2916_v43 = vpop.f32.mrb[147].mxu1 }
 0x3ac   : > { %2976 = vst [vmem:[%s5264_s21] sm:$0xff] %v2914_v27  ;;  %v2917_v45 = vadd.f32 %v3266_v51, %v2916_v43 }
 0x3ad   : > { %2979 = vst [vmem:[%s5264_s21 + $0x18] sm:$0xff] %v2925_v42 }
 0x3ae   : > { %2977 = vst [vmem:[%s5264_s21 + $0x8] sm:$0xff] %v2917_v45 }
 0x3b8   : > { %v3639_v16 = vpop.f32.mrb[148].mxu1 }
 0x3b9   : > { %v2938_v38 = vadd.f32 %v3639_v16, %v3266_v51  ;;  %v2929_v50 = vpop.f32.mrb[149].mxu1 }
 0x3ba   : > { %v2930_v15 = vadd.f32 %v3266_v51, %v2929_v50  ;;  %v3640_v31 = vpop.f32.mrb[150].mxu1 }
 0x3bb   : > { %2982 = vst [vmem:[%s5264_s21 + $0x30] sm:$0xff] %v2938_v38  ;;  %v2941_v60 = vadd.f32 %v3640_v31, %v3266_v51  ;;  %v2932_v61 = vpop.f32.mrb[151].mxu1 }
 0x3bc   : > { %2980 = vst [vmem:[%s5264_s21 + $0x20] sm:$0xff] %v2930_v15  ;;  %v2933_v63 = vadd.f32 %v3266_v51, %v2932_v61 }
 0x3bd   : > { %2983 = vst [vmem:[%s5264_s21 + $0x38] sm:$0xff] %v2941_v60 }
 0x3be   : > { %2981 = vst [vmem:[%s5264_s21 + $0x28] sm:$0xff] %v2933_v63 }
 0x3c8   : > { %v3643_v22 = vpop.f32.mrb[152].mxu1 }
 0x3c9   : > { %v2954_v1 = vadd.f32 %v3643_v22, %v3266_v51  ;;  %v2945_v25 = vpop.f32.mrb[153].mxu1 }
 0x3ca   : > { %v2946_v0 = vadd.f32 %v3266_v51, %v2945_v25  ;;  %v3644_v59 = vpop.f32.mrb[154].mxu1 }
 0x3cb   : > { %2986 = vst [vmem:[%s5264_s21 + $0x50] sm:$0xff] %v2954_v1  ;;  %v2957_v12 = vadd.f32 %v3644_v59, %v3266_v51  ;;  %v2948_v39 = vpop.f32.mrb[155].mxu1 }
 0x3cc   : > { %2984 = vst [vmem:[%s5264_s21 + $0x40] sm:$0xff] %v2946_v0  ;;  %v2949_v3 = vadd.f32 %v3266_v51, %v2948_v39 }
 0x3cd   : > { %2987 = vst [vmem:[%s5264_s21 + $0x58] sm:$0xff] %v2957_v12 }
 0x3ce   : > { %2985 = vst [vmem:[%s5264_s21 + $0x48] sm:$0xff] %v2949_v3 }
 0x3d8   : > { %v3647_v40 = vpop.f32.mrb[156].mxu1 }
 0x3d9   : > { %v2970_v5 = vadd.f32 %v3647_v40, %v3266_v51  ;;  %v2961_v44 = vpop.f32.mrb[157].mxu1 }
 0x3da   : > { %v2962_v56 = vadd.f32 %v3266_v51, %v2961_v44  ;;  %v3648_v19 = vpop.f32.mrb[158].mxu1 }
 0x3db   : > { %2990 = vst [vmem:[%s5264_s21 + $0x70] sm:$0xff] %v2970_v5  ;;  %v2973_v57 = vadd.f32 %v3648_v19, %v3266_v51  ;;  %v2964_v6 = vpop.f32.mrb[159].mxu1 }
 0x3dc   : > { %2988 = vst [vmem:[%s5264_s21 + $0x60] sm:$0xff] %v2962_v56  ;;  %v2965_v8 = vadd.f32 %v3266_v51, %v2964_v6 }
 0x3dd   : > { %2991 = vst [vmem:[%s5264_s21 + $0x78] sm:$0xff] %v2973_v57 }
 0x3de   : > { %2989 = vst [vmem:[%s5264_s21 + $0x68] sm:$0xff] %v2965_v8 }
 0x3df   : > { %4057 = shalt.err (!%p4054_p3)
}
 0x3e0   : > { %s4058_s19 = scalar_lea.hbm %s5284_s23, 2048  ;;  %s4062_s15 = scalar_lea.hbm %s5341_s7, 4096 }
 0x3e1   : > { %p4059_p4 = scmp.ne.s32.totalorder %s5284_s23, %s4058_s19  ;;  %p4063_p9 = scmp.lt.u32.totalorder %s5284_s23, %s5341_s7 }
 0x3e2   : > { %p4064_p10 = scmp.lt.u32.totalorder %s4062_s15, %s4058_s19  ;;  %p4066_p12 = scmp.lt.u32.totalorder %s4058_s19, %s5284_s23 }
 0x3e3   : > { %p4060_p7 = pnand %p4059_p4, %p4190_p5 }
 0x3e4   : > { %p4065_p11 = por %p4064_p10, %p4063_p9 }
 0x3e5   : > { %p4061_p8 = pneg %p4060_p7 }
 0x3e6   : > { %p4067_p13 = por %p4066_p12, %p4065_p11 }
 0x3e8   : > { %p4068_p0 = pnand %p4067_p13, %p4061_p8 }
 0x3ea   : > { %4071 = shalt.err (!%p4068_p0)
}
 0x3eb   : > { %s4110_s17 = smov 128   ;;  %s4111_s22 = smov 8  }
 0x3ec   : > { %3780 = dma.vmem_to_hbm [thread:$0]  (%p4190_p5), %s5286_s16, 2048, %s5284_s23, %s5293_s28, %s4110_s17, %s4110_s17, %s4111_s22  }
 0x3ed PF: > { %p3786_p1 = scmp.ge.s32.totalorder %s4106_s27, 2  ;;  %s3021_s29 = sand.u32 1, %s4094_s24  }
 0x3ee   : > { %s3022_s8 = scalar_lea.sflag [#allocation3], %s3021_s29 }
 0x3ef   : > { %p3783_p2 = pnand %p3786_p1, %p4194_p6 }
 0x3f1   : > { %4089 = dma.done.wait (!%p3783_p2), %s3022_s8, 2048  }
 0x3f2   : > { %4091 = vsyncadd (!%p3783_p2), %s3022_s8, 4294965248  ;;  %p17_p3 = scmp.ge.s32.totalorder %s4177_s30, 4   ;;  %s5345_s24 = smov %s4098_s25 }
 0x3f3   : > { %s5346_s25 = smov %s4102_s26  ;;  %s5347_s26 = smov %s4188_s10 }
 0x3f4   : > { %s5348_s27 = smov %s4177_s30  ;;  %19 = sbr.rel (!%p17_p3) target bundleno = 3 (0x3), region = 83 }
 0x3fb   :  { %3027 = vsyncpa [#allocation3], 1 }
 0x3fc   :  { %3029 = vsyncpa [#allocation3 + $0x1], 1 }

</bundles_post_ra>
